<compile_context>
chip_gen: v7x
topology: tpu7x:2x2x1
jax: 0.10.0
libtpu: 0.0.40
codegen_flags: <defaults>
</compile_context>

<pallas_src>
import numpy as np
import jax
import jax.numpy as jnp
from jax.experimental import pallas as pl
from jax.experimental.pallas import tpu as pltpu


# ----------------------------------------------------------------------------
# Deterministic parameter init (port of the PyTorch orthonormal_initializer)
# ----------------------------------------------------------------------------
def orthonormal_initializer(output_size, input_size):
    I = np.eye(output_size)
    lr = 0.1
    eps = 0.05 / (output_size + input_size)
    success = False
    tries = 0
    while not success and tries < 10:
        Q = np.random.randn(input_size, output_size) / np.sqrt(output_size)
        for _ in range(100):
            QTQmI = Q.T.dot(Q) - I
            loss = np.sum(QTQmI ** 2 / 2)
            Q2 = Q ** 2
            Q -= lr * Q.dot(QTQmI) / (
                np.abs(Q2 + Q2.sum(axis=0, keepdims=True)
                       + Q2.sum(axis=1, keepdims=True) - 1) + eps)
            if np.max(Q) > 1e6 or loss > 1e6 or (not np.isfinite(loss)):
                tries += 1
                lr /= 2
                break
        success = True
    if not success:
        Q = np.random.randn(input_size, output_size) / np.sqrt(output_size)
    return np.transpose(Q.astype(np.float32))


def make_params(input_size, hidden_size, num_layers, bidirectional, seed=0):
    """Per layer: direction-stacked (nd, din, 4H) W_ih^T, (nd, H, 4H) W_hh^T, (nd, 1, 4H) bias.
    Gate column order is the PyTorch order (i, f, g, o)."""
    np.random.seed(seed)
    nd = 2 if bidirectional else 1
    params = []
    for layer in range(num_layers):
        din = input_size if layer == 0 else hidden_size * nd
        wih_t, whh_t, bias = [], [], []
        for _ in range(nd):   # forward cell first, then backward (matches reset_parameters)
            W = orthonormal_initializer(hidden_size, hidden_size + din)  # (H, H+din)
            W_h, W_x = W[:, :hidden_size], W[:, hidden_size:]
            wih = np.concatenate([W_x] * 4, 0)   # (4H, din)  -- PyTorch weight_ih
            whh = np.concatenate([W_h] * 4, 0)   # (4H, H)    -- PyTorch weight_hh
            wih_t.append(wih.T)                  # (din, 4H)
            whh_t.append(whh.T)                  # (H, 4H)
            bias.append(np.zeros((1, 4 * hidden_size), np.float32))  # bias_ih + bias_hh
        params.append({
            'wih_t': jnp.asarray(np.stack(wih_t, 0), jnp.float32),   # (nd, din, 4H)
            'whh_t': jnp.asarray(np.stack(whh_t, 0), jnp.float32),   # (nd, H, 4H)
            'b':     jnp.asarray(np.stack(bias, 0), jnp.float32),    # (nd, 1, 4H)
        })
    return params


# ----------------------------------------------------------------------------
# Small helpers
# ----------------------------------------------------------------------------
def _permute_gate_cols(w):
    """Reorder the 4H gate columns from PyTorch (i, f, g, o) to kernel (i, f, o, g).

    With this layout sigmoid covers the contiguous first 3H columns and tanh
    only the last H columns (halves EUP transcendental work per step)."""
    i, f, g, o = jnp.split(w, 4, axis=-1)
    return jnp.concatenate([i, f, o, g], axis=-1)


def _pick_time_chunk(T, target):
    """Largest divisor of T that is <= target (so the chunk loop is exact)."""
    tc = max(1, min(T, target))
    while T % tc != 0:
        tc -= 1
    return tc


def _rnd_up(a, b):
    return -(-a // b) * b


def _vmem_limit_bytes(T, B, D, H, nd, Tc):
    """Rough per-layer VMEM estimate ((8,128)-padded f32, x2 for double buffering).

    Re-derived per call so the scoped limit can be raised when needed; clamped
    below v7x's 64 MiB physical VMEM (shrink time_chunk for larger shapes)."""
    f32 = 4
    G = 4 * H
    est = 0
    est += T * _rnd_up(B, 8) * _rnd_up(D, 128) * f32            # x
    est += T * _rnd_up(B, 8) * 128 * f32                        # masks (lane 1 -> 128)
    est += nd * _rnd_up(D, 8) * _rnd_up(G, 128) * f32           # W_ih^T
    est += nd * _rnd_up(H, 8) * _rnd_up(G, 128) * f32           # W_hh^T
    est += nd * 8 * _rnd_up(G, 128) * f32                       # bias
    est += 2 * _rnd_up(B, 8) * _rnd_up(H, 128) * f32            # h0, c0
    est += T * _rnd_up(B, 8) * _rnd_up(nd * H, 128) * f32       # out
    est += 2 * _rnd_up(B, 8) * _rnd_up(nd * H, 128) * f32       # h_n, c_n
    est += nd * Tc * _rnd_up(B, 8) * _rnd_up(G, 128) * f32      # gx scratch
    est = 2 * est + (4 << 20)
    return int(min(max(est, 32 << 20), 56 << 20))


# ----------------------------------------------------------------------------
# Pallas kernel: one layer, both directions fused, chunked input projection
# ----------------------------------------------------------------------------
def _lstm_layer_kernel(x_ref, m_ref, wih_ref, whh_ref, b_ref, h0_ref, c0_ref,
                       out_ref, hn_ref, cn_ref, *gx_scrs):
    T, B, D = x_ref.shape
    ndir = wih_ref.shape[0]            # static: 1 or 2
    H = whh_ref.shape[1]
    G = 4 * H
    Tc = gx_scrs[0].shape[0]           # time-chunk length (divides T)
    C = T // Tc
    unroll = min(8, Tc)                # bounded unroll (review: no full unroll)

    h0 = h0_ref[...]                   # (B, H), reused as the mask reset value
    c0 = c0_ref[...]
    wih = [wih_ref[d] for d in range(ndir)]     # (D, 4H)
    whh = [whh_ref[d] for d in range(ndir)]     # (H, 4H)
    bias = [b_ref[d] for d in range(ndir)]      # (1, 4H)

    def project(x_chunk, d):
        # Hoisted input projection for one time chunk: (Tc*B, D) @ (D, 4H).
        # NOTE: layout-free merge only when B is a multiple of 8 (f32 sublane).
        g = jnp.dot(x_chunk.reshape(Tc * B, D), wih[d],
                    preferred_element_type=jnp.float32) + bias[d]
        return g.reshape(Tc, B, G)

    def cell(gates, c_prev, m):
        # Gate layout (i, f, o, g): sigmoid on the first 3H columns only,
        # tanh on the last H columns (EUP work ~halved vs sigmoid+tanh on 4H).
        sig = jax.nn.sigmoid(gates[:, :3 * H])
        g_g = jnp.tanh(gates[:, 3 * H:])
        i_g = sig[:, 0:H]
        f_g = sig[:, H:2 * H]
        o_g = sig[:, 2 * H:3 * H]
        c_next = f_g * c_prev + i_g * g_g
        h_next = o_g * jnp.tanh(c_next)
        # sequence masking against the *initial* state (module semantics)
        h_next = h0 + m * (h_next - h0)
        c_next = c0 + m * (c_next - c0)
        return h_next, c_next

    def chunk_body(k, carry):
        # forward direction consumes chunk k    : times [k*Tc, (k+1)*Tc)
        # backward direction consumes chunk C-1-k (processed in reverse time)
        f_base = pl.multiple_of(k * Tc, Tc)
        gx_scrs[0][...] = project(x_ref[pl.ds(f_base, Tc), :, :], 0)
        if ndir == 2:
            b_base = pl.multiple_of((C - 1 - k) * Tc, Tc)
            gx_scrs[1][...] = project(x_ref[pl.ds(b_base, Tc), :, :], 1)

        def step(s, c2):
            h_f, c_f = c2[0], c2[1]
            tf = f_base + s
            gates_f = gx_scrs[0][s] + jnp.dot(h_f, whh[0],
                                              preferred_element_type=jnp.float32)
            h_f, c_f = cell(gates_f, c_f, m_ref[tf])
            out_ref[tf, :, 0:H] = h_f              # forward half of the lane-dense output
            if ndir == 1:
                return (h_f, c_f)

            # backward direction interleaved in the same step (fills MXU/EUP bubbles)
            h_b, c_b = c2[2], c2[3]
            sb = Tc - 1 - s
            tb = b_base + sb
            gates_b = gx_scrs[1][sb] + jnp.dot(h_b, whh[1],
                                               preferred_element_type=jnp.float32)
            h_b, c_b = cell(gates_b, c_b, m_ref[tb])
            out_ref[tb, :, H:2 * H] = h_b          # backward half (concat fused)
            return (h_f, c_f, h_b, c_b)

        # (h, c) carries stay in vregs across the serial recurrence
        return jax.lax.fori_loop(0, Tc, step, carry, unroll=unroll)

    init = (h0, c0, h0, c0) if ndir == 2 else (h0, c0)
    final = jax.lax.fori_loop(0, C, chunk_body, init)

    hn_ref[:, 0:H] = final[0]
    cn_ref[:, 0:H] = final[1]
    if ndir == 2:
        hn_ref[:, H:2 * H] = final[2]
        cn_ref[:, H:2 * H] = final[3]


def lstm_layer(x, masks, wih_t, whh_t, bias, h0, c0, *, time_chunk=32):
    """One layer (both directions fused) in a single pallas_call.

    Weights must already be in kernel gate order (i, f, o, g)."""
    T, B, D = x.shape
    nd, _, G = wih_t.shape     # G = 4H
    H = G // 4
    Tc = _pick_time_chunk(T, time_chunk)
    assert T % Tc == 0

    out_shape = (
        jax.ShapeDtypeStruct((T, B, nd * H), jnp.float32),   # lane-dense output (fwd|bwd)
        jax.ShapeDtypeStruct((B, nd * H), jnp.float32),      # h_n
        jax.ShapeDtypeStruct((B, nd * H), jnp.float32),      # c_n
    )

    grid_spec = pltpu.PrefetchScalarGridSpec(
        num_scalar_prefetch=0,
        grid=(1,),
        in_specs=[
            pl.BlockSpec((T, B, D), lambda i: (0, 0, 0)),        # x
            pl.BlockSpec((T, B, 1), lambda i: (0, 0, 0)),        # masks (no H-broadcast in HBM)
            pl.BlockSpec((nd, D, G), lambda i: (0, 0, 0)),       # W_ih^T (both directions)
            pl.BlockSpec((nd, H, G), lambda i: (0, 0, 0)),       # W_hh^T
            pl.BlockSpec((nd, 1, G), lambda i: (0, 0, 0)),       # bias
            pl.BlockSpec((B, H), lambda i: (0, 0)),              # h0
            pl.BlockSpec((B, H), lambda i: (0, 0)),              # c0
        ],
        out_specs=[
            pl.BlockSpec((T, B, nd * H), lambda i: (0, 0, 0)),
            pl.BlockSpec((B, nd * H), lambda i: (0, 0)),
            pl.BlockSpec((B, nd * H), lambda i: (0, 0)),
        ],
        scratch_shapes=[pltpu.VMEM((Tc, B, G), jnp.float32) for _ in range(nd)],
    )

    return pl.pallas_call(
        _lstm_layer_kernel,
        out_shape=out_shape,
        grid_spec=grid_spec,
        compiler_params=pltpu.CompilerParams(
            dimension_semantics=("arbitrary",),
            vmem_limit_bytes=_vmem_limit_bytes(T, B, D, H, nd, Tc)),
    )(x, masks, wih_t, whh_t, bias, h0, c0)


# ----------------------------------------------------------------------------
# Full module forward (layer stacking in plain JAX; no per-layer concat)
# ----------------------------------------------------------------------------
def lstm_forward(x, masks, params, hidden_size, num_layers, bidirectional,
                 initial=None, time_chunk=32):
    T, B, _ = x.shape
    H = hidden_size
    masks = masks.astype(jnp.float32)
    if masks.ndim == 2:
        masks = masks[:, :, None]

    if initial is None:
        h0 = jnp.zeros((B, H), jnp.float32)
        c0 = jnp.zeros((B, H), jnp.float32)
    else:
        # The PyTorch module reuses the same (B, H) pair for every layer and
        # both directions (and as the mask reset value) -- reproduced here.
        h0, c0 = initial

    h_n, c_n, allhiddens = [], [], []
    inp = x
    for layer in range(num_layers):
        p = params[layer]
        wih_t = _permute_gate_cols(p['wih_t'])   # (i,f,g,o) -> (i,f,o,g)
        whh_t = _permute_gate_cols(p['whh_t'])
        b = _permute_gate_cols(p['b'])
        out, hn, cn = lstm_layer(inp, masks, wih_t, whh_t, b, h0, c0,
                                 time_chunk=time_chunk)
        inp = out                                 # already (T, B, nd*H): no concat needed
        h_n.append(hn)
        c_n.append(cn)
        allhiddens.append(inp)

    return inp, (jnp.stack(h_n, 0), jnp.stack(c_n, 0), allhiddens)


# ----------------------------------------------------------------------------
# Pure-JAX reference (eval-mode PyTorch semantics, PyTorch gate order)
# ----------------------------------------------------------------------------
def _cell_ref(x, h, c, wih_t, whh_t, b):
    gates = x @ wih_t + h @ whh_t + b
    H = h.shape[-1]
    i = jax.nn.sigmoid(gates[:, 0 * H:1 * H])
    f = jax.nn.sigmoid(gates[:, 1 * H:2 * H])
    g = jnp.tanh(gates[:, 2 * H:3 * H])
    o = jax.nn.sigmoid(gates[:, 3 * H:4 * H])
    c_next = f * c + i * g
    h_next = o * jnp.tanh(c_next)
    return h_next, c_next


def lstm_forward_ref(x, masks, params, hidden_size, num_layers, bidirectional):
    T, B, _ = x.shape
    H = hidden_size
    nd = 2 if bidirectional else 1
    h0 = jnp.zeros((B, H), jnp.float32)
    c0 = jnp.zeros((B, H), jnp.float32)
    inp = x
    h_n, c_n = [], []
    for layer in range(num_layers):
        p = params[layer]
        outs, hns, cns = [], [], []
        for di in range(nd):
            wih_t, whh_t, b = p['wih_t'][di], p['whh_t'][di], p['b'][di]
            h, c = h0, c0
            out = [None] * T
            times = range(T) if di == 0 else reversed(range(T))
            for t in times:
                hh, cc = _cell_ref(inp[t], h, c, wih_t, whh_t, b)
                m = masks[t]
                hh = hh * m + h0 * (1 - m)
                cc = cc * m + c0 * (1 - m)
                out[t] = hh
                h, c = hh, cc
            outs.append(jnp.stack(out, 0))
            hns.append(h)
            cns.append(c)
        inp = jnp.concatenate(outs, axis=2) if nd == 2 else outs[0]
        h_n.append(jnp.concatenate(hns, axis=1) if nd == 2 else hns[0])
        c_n.append(jnp.concatenate(cns, axis=1) if nd == 2 else cns[0])
    return inp, jnp.stack(h_n, 0), jnp.stack(c_n, 0)


# ----------------------------------------------------------------------------
if __name__ == "__main__":
    INPUT_SIZE = 32
    HIDDEN_SIZE = 32
    NUM_LAYERS = 2
    T, B = 8, 8

    key = jax.random.PRNGKey(0)
    kx, km = jax.random.split(key)
    x = jax.random.normal(kx, (T, B, INPUT_SIZE), dtype=jnp.float32)
    masks = (jax.random.uniform(km, (T, B, 1)) > 0.2).astype(jnp.float32)

    # --- bidirectional, 2 layers; time_chunk=4 exercises the chunked Phase-1 loop
    params = make_params(INPUT_SIZE, HIDDEN_SIZE, NUM_LAYERS, True, seed=0)
    # Perturb weights/biases per gate column so i/f/g/o are distinct; this makes
    # the test actually validate the host-side gate reordering.
    kp = jax.random.PRNGKey(42)
    for p in params:
        for name in ('wih_t', 'whh_t', 'b'):
            kp, sub = jax.random.split(kp)
            p[name] = p[name] + 0.1 * jax.random.normal(sub, p[name].shape,
                                                        dtype=jnp.float32)

    out, (h_n, c_n, allhiddens) = lstm_forward(
        x, masks, params, HIDDEN_SIZE, NUM_LAYERS, True, time_chunk=4)
    jax.block_until_ready(out)
    jax.block_until_ready(h_n)
    jax.block_until_ready(c_n)

    assert out.shape == (T, B, HIDDEN_SIZE * 2)
    assert h_n.shape == (NUM_LAYERS, B, HIDDEN_SIZE * 2)
    assert c_n.shape == (NUM_LAYERS, B, HIDDEN_SIZE * 2)
    assert len(allhiddens) == NUM_LAYERS

    ref_out, ref_hn, ref_cn = lstm_forward_ref(
        x, masks, params, HIDDEN_SIZE, NUM_LAYERS, True)
    np.testing.assert_allclose(np.asarray(out), np.asarray(ref_out),
                               rtol=1e-3, atol=1e-4)
    np.testing.assert_allclose(np.asarray(h_n), np.asarray(ref_hn),
                               rtol=1e-3, atol=1e-4)
    np.testing.assert_allclose(np.asarray(c_n), np.asarray(ref_cn),
                               rtol=1e-3, atol=1e-4)

    # --- unidirectional single-layer path (exercises ndir == 1 branch)
    params1 = make_params(INPUT_SIZE, HIDDEN_SIZE, 1, False, seed=1)
    out1, (hn1, cn1, _) = lstm_forward(
        x, masks, params1, HIDDEN_SIZE, 1, False, time_chunk=8)
    jax.block_until_ready(out1)
    assert out1.shape == (T, B, HIDDEN_SIZE)
    ref1_out, ref1_hn, ref1_cn = lstm_forward_ref(
        x, masks, params1, HIDDEN_SIZE, 1, False)
    np.testing.assert_allclose(np.asarray(out1), np.asarray(ref1_out),
                               rtol=1e-3, atol=1e-4)
    np.testing.assert_allclose(np.asarray(hn1), np.asarray(ref1_hn),
                               rtol=1e-3, atol=1e-4)
    np.testing.assert_allclose(np.asarray(cn1), np.asarray(ref1_cn),
                               rtol=1e-3, atol=1e-4)

    print("KERNEL_OK")
</pallas_src>

<mosaic_0001>
module attributes {stable_mosaic.version = 11 : i64} {
  func.func @_lstm_layer_kernel(%arg0: i32, %arg1: memref<8x8x32xf32, #tpu.memory_space<vmem>>, %arg2: memref<8x8x1xf32, #tpu.memory_space<vmem>>, %arg3: memref<2x32x128xf32, #tpu.memory_space<vmem>>, %arg4: memref<2x32x128xf32, #tpu.memory_space<vmem>>, %arg5: memref<2x1x128xf32, #tpu.memory_space<vmem>>, %arg6: memref<8x32xf32, #tpu.memory_space<vmem>>, %arg7: memref<8x32xf32, #tpu.memory_space<vmem>>, %arg8: memref<8x8x64xf32, #tpu.memory_space<vmem>>, %arg9: memref<8x64xf32, #tpu.memory_space<vmem>>, %arg10: memref<8x64xf32, #tpu.memory_space<vmem>>, %arg11: memref<4x8x128xf32, #tpu.memory_space<vmem>>, %arg12: memref<4x8x128xf32, #tpu.memory_space<vmem>>) attributes {dimension_semantics = [#tpu.dimension_semantics<arbitrary>], iteration_bounds = array<i64: 1>, scalar_prefetch = 0 : i64, scratch_operands = 2 : i64, tpu.core_type = #tpu.core_type<tc>, window_params = [{pipeline_mode = #tpu.pipeline_mode<synchronous>, transform_indices = @transform_0, window_bounds = array<i64: 8, 8, 32>}, {pipeline_mode = #tpu.pipeline_mode<synchronous>, transform_indices = @transform_1, window_bounds = array<i64: 8, 8, 1>}, {pipeline_mode = #tpu.pipeline_mode<synchronous>, transform_indices = @transform_2, window_bounds = array<i64: 2, 32, 128>}, {pipeline_mode = #tpu.pipeline_mode<synchronous>, transform_indices = @transform_3, window_bounds = array<i64: 2, 32, 128>}, {pipeline_mode = #tpu.pipeline_mode<synchronous>, transform_indices = @transform_4, window_bounds = array<i64: 2, 1, 128>}, {pipeline_mode = #tpu.pipeline_mode<synchronous>, transform_indices = @transform_5, window_bounds = array<i64: 8, 32>}, {pipeline_mode = #tpu.pipeline_mode<synchronous>, transform_indices = @transform_6, window_bounds = array<i64: 8, 32>}, {pipeline_mode = #tpu.pipeline_mode<synchronous>, transform_indices = @transform_7, window_bounds = array<i64: 8, 8, 64>}, {pipeline_mode = #tpu.pipeline_mode<synchronous>, transform_indices = @transform_8, window_bounds = array<i64: 8, 64>}, {pipeline_mode = #tpu.pipeline_mode<synchronous>, transform_indices = @transform_9, window_bounds = array<i64: 8, 64>}]} {
    %c0 = arith.constant 0 : index
    %c0_0 = arith.constant 0 : index
    %0 = vector.load %arg6[%c0, %c0_0] : memref<8x32xf32, #tpu.memory_space<vmem>>, vector<8x32xf32>
    %c0_1 = arith.constant 0 : index
    %c0_2 = arith.constant 0 : index
    %1 = vector.load %arg7[%c0_1, %c0_2] : memref<8x32xf32, #tpu.memory_space<vmem>>, vector<8x32xf32>
    %c0_3 = arith.constant 0 : index
    %c0_4 = arith.constant 0 : index
    %c0_5 = arith.constant 0 : index
    %2 = vector.load %arg3[%c0_3, %c0_4, %c0_5] : memref<2x32x128xf32, #tpu.memory_space<vmem>>, vector<1x32x128xf32>
    %3 = vector.shape_cast %2 : vector<1x32x128xf32> to vector<32x128xf32>
    %c1 = arith.constant 1 : index
    %c0_6 = arith.constant 0 : index
    %c0_7 = arith.constant 0 : index
    %4 = vector.load %arg3[%c1, %c0_6, %c0_7] : memref<2x32x128xf32, #tpu.memory_space<vmem>>, vector<1x32x128xf32>
    %5 = vector.shape_cast %4 : vector<1x32x128xf32> to vector<32x128xf32>
    %c0_8 = arith.constant 0 : index
    %c0_9 = arith.constant 0 : index
    %c0_10 = arith.constant 0 : index
    %6 = vector.load %arg4[%c0_8, %c0_9, %c0_10] : memref<2x32x128xf32, #tpu.memory_space<vmem>>, vector<1x32x128xf32>
    %7 = vector.shape_cast %6 : vector<1x32x128xf32> to vector<32x128xf32>
    %c1_11 = arith.constant 1 : index
    %c0_12 = arith.constant 0 : index
    %c0_13 = arith.constant 0 : index
    %8 = vector.load %arg4[%c1_11, %c0_12, %c0_13] : memref<2x32x128xf32, #tpu.memory_space<vmem>>, vector<1x32x128xf32>
    %9 = vector.shape_cast %8 : vector<1x32x128xf32> to vector<32x128xf32>
    %c0_14 = arith.constant 0 : index
    %c0_15 = arith.constant 0 : index
    %c0_16 = arith.constant 0 : index
    %10 = vector.load %arg5[%c0_14, %c0_15, %c0_16] : memref<2x1x128xf32, #tpu.memory_space<vmem>>, vector<1x1x128xf32>
    %11 = vector.shape_cast %10 : vector<1x1x128xf32> to vector<1x128xf32>
    %c1_17 = arith.constant 1 : index
    %c0_18 = arith.constant 0 : index
    %c0_19 = arith.constant 0 : index
    %12 = vector.load %arg5[%c1_17, %c0_18, %c0_19] : memref<2x1x128xf32, #tpu.memory_space<vmem>>, vector<1x1x128xf32>
    %13 = vector.shape_cast %12 : vector<1x1x128xf32> to vector<1x128xf32>
    %c0_i32 = arith.constant 0 : i32
    %c2_i32 = arith.constant 2 : i32
    %14 = arith.addi %c0_i32, %c2_i32 : i32
    %c1_i32 = arith.constant 1 : i32
    %15:4 = scf.for %arg13 = %c0_i32 to %14 step %c1_i32 iter_args(%arg14 = %0, %arg15 = %1, %arg16 = %0, %arg17 = %1) -> (vector<8x32xf32>, vector<8x32xf32>, vector<8x32xf32>, vector<8x32xf32>)  : i32 {
      %c4_i32 = arith.constant 4 : i32
      %20 = arith.muli %arg13, %c4_i32 : i32
      %21 = tpu.assume_multiple %20, 4 : i32
      %22 = arith.index_cast %21 : i32 to index
      %c0_28 = arith.constant 0 : index
      %c0_29 = arith.constant 0 : index
      %23 = vector.load %arg1[%22, %c0_28, %c0_29] : memref<8x8x32xf32, #tpu.memory_space<vmem>>, vector<4x8x32xf32>
      %24 = vector.shape_cast %23 : vector<4x8x32xf32> to vector<32x32xf32>
      %cst = arith.constant dense<0.000000e+00> : vector<32x128xf32>
      %25 = tpu.matmul %24, %3, %cst {dimension_numbers = #tpu.dot_dimension_numbers<[1], [0], [0], [1], [0, 0, 1, 1], [], []>} : vector<32x32xf32>, vector<32x128xf32>, vector<32x128xf32> -> vector<32x128xf32>
      %26 = vector.broadcast %11 : vector<1x128xf32> to vector<32x128xf32>
      %27 = arith.addf %25, %26 : vector<32x128xf32>
      %28 = vector.shape_cast %27 : vector<32x128xf32> to vector<4x8x128xf32>
      %c0_30 = arith.constant 0 : index
      %c0_31 = arith.constant 0 : index
      %c0_32 = arith.constant 0 : index
      %29 = vector.load %arg11[%c0_30, %c0_31, %c0_32] : memref<4x8x128xf32, #tpu.memory_space<vmem>>, vector<4x8x128xf32>
      tpu.vector_store %arg11[%c0_30, %c0_31, %c0_32], %28 {strides = array<i32>} : memref<4x8x128xf32, #tpu.memory_space<vmem>>, vector<4x8x128xf32>,
      %c1_i32_33 = arith.constant 1 : i32
      %30 = arith.subi %c1_i32_33, %arg13 : i32
      %c4_i32_34 = arith.constant 4 : i32
      %31 = arith.muli %30, %c4_i32_34 : i32
      %32 = tpu.assume_multiple %31, 4 : i32
      %33 = arith.index_cast %32 : i32 to index
      %c0_35 = arith.constant 0 : index
      %c0_36 = arith.constant 0 : index
      %34 = vector.load %arg1[%33, %c0_35, %c0_36] : memref<8x8x32xf32, #tpu.memory_space<vmem>>, vector<4x8x32xf32>
      %35 = vector.shape_cast %34 : vector<4x8x32xf32> to vector<32x32xf32>
      %cst_37 = arith.constant dense<0.000000e+00> : vector<32x128xf32>
      %36 = tpu.matmul %35, %5, %cst_37 {dimension_numbers = #tpu.dot_dimension_numbers<[1], [0], [0], [1], [0, 0, 1, 1], [], []>} : vector<32x32xf32>, vector<32x128xf32>, vector<32x128xf32> -> vector<32x128xf32>
      %37 = vector.broadcast %13 : vector<1x128xf32> to vector<32x128xf32>
      %38 = arith.addf %36, %37 : vector<32x128xf32>
      %39 = vector.shape_cast %38 : vector<32x128xf32> to vector<4x8x128xf32>
      %c0_38 = arith.constant 0 : index
      %c0_39 = arith.constant 0 : index
      %c0_40 = arith.constant 0 : index
      %40 = vector.load %arg12[%c0_38, %c0_39, %c0_40] : memref<4x8x128xf32, #tpu.memory_space<vmem>>, vector<4x8x128xf32>
      tpu.vector_store %arg12[%c0_38, %c0_39, %c0_40], %39 {strides = array<i32>} : memref<4x8x128xf32, #tpu.memory_space<vmem>>, vector<4x8x128xf32>,
      %c0_i32_41 = arith.constant 0 : i32
      %41 = arith.addi %21, %c0_i32_41 : i32
      %42 = arith.index_cast %c0_i32_41 : i32 to index
      %c0_42 = arith.constant 0 : index
      %c0_43 = arith.constant 0 : index
      %43 = vector.load %arg11[%42, %c0_42, %c0_43] : memref<4x8x128xf32, #tpu.memory_space<vmem>>, vector<1x8x128xf32>
      %44 = vector.shape_cast %43 : vector<1x8x128xf32> to vector<8x128xf32>
      %cst_44 = arith.constant dense<0.000000e+00> : vector<8x128xf32>
      %45 = tpu.matmul %arg14, %7, %cst_44 {dimension_numbers = #tpu.dot_dimension_numbers<[1], [0], [0], [1], [0, 0, 1, 1], [], []>} : vector<8x32xf32>, vector<32x128xf32>, vector<8x128xf32> -> vector<8x128xf32>
      %46 = arith.addf %44, %45 : vector<8x128xf32>
      %47 = arith.index_cast %41 : i32 to index
      %c0_45 = arith.constant 0 : index
      %c0_46 = arith.constant 0 : index
      %48 = vector.load %arg2[%47, %c0_45, %c0_46] : memref<8x8x1xf32, #tpu.memory_space<vmem>>, vector<1x8x1xf32>
      %49 = vector.shape_cast %48 : vector<1x8x1xf32> to vector<8x1xf32>
      %50 = vector.extract_strided_slice %46 {offsets = [0, 0], sizes = [8, 96], strides = [1, 1]} : vector<8x128xf32> to vector<8x96xf32>
      %51 = arith.negf %50 : vector<8x96xf32>
      %52 = math.exp %51 : vector<8x96xf32>
      %cst_47 = arith.constant 1.000000e+00 : f32
      %53 = vector.broadcast %cst_47 : f32 to vector<8x96xf32>
      %54 = arith.addf %53, %52 : vector<8x96xf32>
      %55 = arith.divf %53, %54 : vector<8x96xf32>
      %56 = vector.extract_strided_slice %46 {offsets = [0, 96], sizes = [8, 32], strides = [1, 1]} : vector<8x128xf32> to vector<8x32xf32>
      %57 = math.tanh %56 : vector<8x32xf32>
      %58 = vector.extract_strided_slice %55 {offsets = [0, 0], sizes = [8, 32], strides = [1, 1]} : vector<8x96xf32> to vector<8x32xf32>
      %59 = vector.extract_strided_slice %55 {offsets = [0, 32], sizes = [8, 32], strides = [1, 1]} : vector<8x96xf32> to vector<8x32xf32>
      %60 = vector.extract_strided_slice %55 {offsets = [0, 64], sizes = [8, 32], strides = [1, 1]} : vector<8x96xf32> to vector<8x32xf32>
      %61 = arith.mulf %59, %arg15 : vector<8x32xf32>
      %62 = arith.mulf %58, %57 : vector<8x32xf32>
      %63 = arith.addf %61, %62 : vector<8x32xf32>
      %64 = math.tanh %63 : vector<8x32xf32>
      %65 = arith.mulf %60, %64 : vector<8x32xf32>
      %66 = arith.subf %65, %0 : vector<8x32xf32>
      %67 = vector.broadcast %49 : vector<8x1xf32> to vector<8x32xf32>
      %68 = arith.mulf %67, %66 : vector<8x32xf32>
      %69 = arith.addf %0, %68 : vector<8x32xf32>
      %70 = arith.subf %63, %1 : vector<8x32xf32>
      %71 = vector.broadcast %49 : vector<8x1xf32> to vector<8x32xf32>
      %72 = arith.mulf %71, %70 : vector<8x32xf32>
      %73 = arith.addf %1, %72 : vector<8x32xf32>
      %74 = arith.index_cast %41 : i32 to index
      %c0_48 = arith.constant 0 : index
      %c0_49 = arith.constant 0 : index
      %75 = vector.load %arg8[%74, %c0_48, %c0_49] : memref<8x8x64xf32, #tpu.memory_space<vmem>>, vector<1x8x32xf32>
      %76 = vector.shape_cast %75 : vector<1x8x32xf32> to vector<8x32xf32>
      %77 = vector.shape_cast %69 : vector<8x32xf32> to vector<1x8x32xf32>
      tpu.vector_store %arg8[%74, %c0_48, %c0_49], %77 {strides = array<i32>} : memref<8x8x64xf32, #tpu.memory_space<vmem>>, vector<1x8x32xf32>,
      %c3_i32 = arith.constant 3 : i32
      %78 = arith.subi %c3_i32, %c0_i32_41 : i32
      %79 = arith.addi %32, %78 : i32
      %80 = arith.index_cast %78 : i32 to index
      %c0_50 = arith.constant 0 : index
      %c0_51 = arith.constant 0 : index
      %81 = vector.load %arg12[%80, %c0_50, %c0_51] : memref<4x8x128xf32, #tpu.memory_space<vmem>>, vector<1x8x128xf32>
      %82 = vector.shape_cast %81 : vector<1x8x128xf32> to vector<8x128xf32>
      %cst_52 = arith.constant dense<0.000000e+00> : vector<8x128xf32>
      %83 = tpu.matmul %arg16, %9, %cst_52 {dimension_numbers = #tpu.dot_dimension_numbers<[1], [0], [0], [1], [0, 0, 1, 1], [], []>} : vector<8x32xf32>, vector<32x128xf32>, vector<8x128xf32> -> vector<8x128xf32>
      %84 = arith.addf %82, %83 : vector<8x128xf32>
      %85 = arith.index_cast %79 : i32 to index
      %c0_53 = arith.constant 0 : index
      %c0_54 = arith.constant 0 : index
      %86 = vector.load %arg2[%85, %c0_53, %c0_54] : memref<8x8x1xf32, #tpu.memory_space<vmem>>, vector<1x8x1xf32>
      %87 = vector.shape_cast %86 : vector<1x8x1xf32> to vector<8x1xf32>
      %88 = vector.extract_strided_slice %84 {offsets = [0, 0], sizes = [8, 96], strides = [1, 1]} : vector<8x128xf32> to vector<8x96xf32>
      %89 = arith.negf %88 : vector<8x96xf32>
      %90 = math.exp %89 : vector<8x96xf32>
      %cst_55 = arith.constant 1.000000e+00 : f32
      %91 = vector.broadcast %cst_55 : f32 to vector<8x96xf32>
      %92 = arith.addf %91, %90 : vector<8x96xf32>
      %93 = arith.divf %91, %92 : vector<8x96xf32>
      %94 = vector.extract_strided_slice %84 {offsets = [0, 96], sizes = [8, 32], strides = [1, 1]} : vector<8x128xf32> to vector<8x32xf32>
      %95 = math.tanh %94 : vector<8x32xf32>
      %96 = vector.extract_strided_slice %93 {offsets = [0, 0], sizes = [8, 32], strides = [1, 1]} : vector<8x96xf32> to vector<8x32xf32>
      %97 = vector.extract_strided_slice %93 {offsets = [0, 32], sizes = [8, 32], strides = [1, 1]} : vector<8x96xf32> to vector<8x32xf32>
      %98 = vector.extract_strided_slice %93 {offsets = [0, 64], sizes = [8, 32], strides = [1, 1]} : vector<8x96xf32> to vector<8x32xf32>
      %99 = arith.mulf %97, %arg17 : vector<8x32xf32>
      %100 = arith.mulf %96, %95 : vector<8x32xf32>
      %101 = arith.addf %99, %100 : vector<8x32xf32>
      %102 = math.tanh %101 : vector<8x32xf32>
      %103 = arith.mulf %98, %102 : vector<8x32xf32>
      %104 = arith.subf %103, %0 : vector<8x32xf32>
      %105 = vector.broadcast %87 : vector<8x1xf32> to vector<8x32xf32>
      %106 = arith.mulf %105, %104 : vector<8x32xf32>
      %107 = arith.addf %0, %106 : vector<8x32xf32>
      %108 = arith.subf %101, %1 : vector<8x32xf32>
      %109 = vector.broadcast %87 : vector<8x1xf32> to vector<8x32xf32>
      %110 = arith.mulf %109, %108 : vector<8x32xf32>
      %111 = arith.addf %1, %110 : vector<8x32xf32>
      %112 = arith.index_cast %79 : i32 to index
      %c0_56 = arith.constant 0 : index
      %c32_57 = arith.constant 32 : index
      %113 = vector.load %arg8[%112, %c0_56, %c32_57] : memref<8x8x64xf32, #tpu.memory_space<vmem>>, vector<1x8x32xf32>
      %114 = vector.shape_cast %113 : vector<1x8x32xf32> to vector<8x32xf32>
      %115 = vector.shape_cast %107 : vector<8x32xf32> to vector<1x8x32xf32>
      tpu.vector_store %arg8[%112, %c0_56, %c32_57], %115 {strides = array<i32>} : memref<8x8x64xf32, #tpu.memory_space<vmem>>, vector<1x8x32xf32>,
      %c1_i32_58 = arith.constant 1 : i32
      %116 = arith.addi %21, %c1_i32_58 : i32
      %117 = arith.index_cast %c1_i32_58 : i32 to index
      %c0_59 = arith.constant 0 : index
      %c0_60 = arith.constant 0 : index
      %118 = vector.load %arg11[%117, %c0_59, %c0_60] : memref<4x8x128xf32, #tpu.memory_space<vmem>>, vector<1x8x128xf32>
      %119 = vector.shape_cast %118 : vector<1x8x128xf32> to vector<8x128xf32>
      %cst_61 = arith.constant dense<0.000000e+00> : vector<8x128xf32>
      %120 = tpu.matmul %69, %7, %cst_61 {dimension_numbers = #tpu.dot_dimension_numbers<[1], [0], [0], [1], [0, 0, 1, 1], [], []>} : vector<8x32xf32>, vector<32x128xf32>, vector<8x128xf32> -> vector<8x128xf32>
      %121 = arith.addf %119, %120 : vector<8x128xf32>
      %122 = arith.index_cast %116 : i32 to index
      %c0_62 = arith.constant 0 : index
      %c0_63 = arith.constant 0 : index
      %123 = vector.load %arg2[%122, %c0_62, %c0_63] : memref<8x8x1xf32, #tpu.memory_space<vmem>>, vector<1x8x1xf32>
      %124 = vector.shape_cast %123 : vector<1x8x1xf32> to vector<8x1xf32>
      %125 = vector.extract_strided_slice %121 {offsets = [0, 0], sizes = [8, 96], strides = [1, 1]} : vector<8x128xf32> to vector<8x96xf32>
      %126 = arith.negf %125 : vector<8x96xf32>
      %127 = math.exp %126 : vector<8x96xf32>
      %cst_64 = arith.constant 1.000000e+00 : f32
      %128 = vector.broadcast %cst_64 : f32 to vector<8x96xf32>
      %129 = arith.addf %128, %127 : vector<8x96xf32>
      %130 = arith.divf %128, %129 : vector<8x96xf32>
      %131 = vector.extract_strided_slice %121 {offsets = [0, 96], sizes = [8, 32], strides = [1, 1]} : vector<8x128xf32> to vector<8x32xf32>
      %132 = math.tanh %131 : vector<8x32xf32>
      %133 = vector.extract_strided_slice %130 {offsets = [0, 0], sizes = [8, 32], strides = [1, 1]} : vector<8x96xf32> to vector<8x32xf32>
      %134 = vector.extract_strided_slice %130 {offsets = [0, 32], sizes = [8, 32], strides = [1, 1]} : vector<8x96xf32> to vector<8x32xf32>
      %135 = vector.extract_strided_slice %130 {offsets = [0, 64], sizes = [8, 32], strides = [1, 1]} : vector<8x96xf32> to vector<8x32xf32>
      %136 = arith.mulf %134, %73 : vector<8x32xf32>
      %137 = arith.mulf %133, %132 : vector<8x32xf32>
      %138 = arith.addf %136, %137 : vector<8x32xf32>
      %139 = math.tanh %138 : vector<8x32xf32>
      %140 = arith.mulf %135, %139 : vector<8x32xf32>
      %141 = arith.subf %140, %0 : vector<8x32xf32>
      %142 = vector.broadcast %124 : vector<8x1xf32> to vector<8x32xf32>
      %143 = arith.mulf %142, %141 : vector<8x32xf32>
      %144 = arith.addf %0, %143 : vector<8x32xf32>
      %145 = arith.subf %138, %1 : vector<8x32xf32>
      %146 = vector.broadcast %124 : vector<8x1xf32> to vector<8x32xf32>
      %147 = arith.mulf %146, %145 : vector<8x32xf32>
      %148 = arith.addf %1, %147 : vector<8x32xf32>
      %149 = arith.index_cast %116 : i32 to index
      %c0_65 = arith.constant 0 : index
      %c0_66 = arith.constant 0 : index
      %150 = vector.load %arg8[%149, %c0_65, %c0_66] : memref<8x8x64xf32, #tpu.memory_space<vmem>>, vector<1x8x32xf32>
      %151 = vector.shape_cast %150 : vector<1x8x32xf32> to vector<8x32xf32>
      %152 = vector.shape_cast %144 : vector<8x32xf32> to vector<1x8x32xf32>
      tpu.vector_store %arg8[%149, %c0_65, %c0_66], %152 {strides = array<i32>} : memref<8x8x64xf32, #tpu.memory_space<vmem>>, vector<1x8x32xf32>,
      %c3_i32_67 = arith.constant 3 : i32
      %153 = arith.subi %c3_i32_67, %c1_i32_58 : i32
      %154 = arith.addi %32, %153 : i32
      %155 = arith.index_cast %153 : i32 to index
      %c0_68 = arith.constant 0 : index
      %c0_69 = arith.constant 0 : index
      %156 = vector.load %arg12[%155, %c0_68, %c0_69] : memref<4x8x128xf32, #tpu.memory_space<vmem>>, vector<1x8x128xf32>
      %157 = vector.shape_cast %156 : vector<1x8x128xf32> to vector<8x128xf32>
      %cst_70 = arith.constant dense<0.000000e+00> : vector<8x128xf32>
      %158 = tpu.matmul %107, %9, %cst_70 {dimension_numbers = #tpu.dot_dimension_numbers<[1], [0], [0], [1], [0, 0, 1, 1], [], []>} : vector<8x32xf32>, vector<32x128xf32>, vector<8x128xf32> -> vector<8x128xf32>
      %159 = arith.addf %157, %158 : vector<8x128xf32>
      %160 = arith.index_cast %154 : i32 to index
      %c0_71 = arith.constant 0 : index
      %c0_72 = arith.constant 0 : index
      %161 = vector.load %arg2[%160, %c0_71, %c0_72] : memref<8x8x1xf32, #tpu.memory_space<vmem>>, vector<1x8x1xf32>
      %162 = vector.shape_cast %161 : vector<1x8x1xf32> to vector<8x1xf32>
      %163 = vector.extract_strided_slice %159 {offsets = [0, 0], sizes = [8, 96], strides = [1, 1]} : vector<8x128xf32> to vector<8x96xf32>
      %164 = arith.negf %163 : vector<8x96xf32>
      %165 = math.exp %164 : vector<8x96xf32>
      %cst_73 = arith.constant 1.000000e+00 : f32
      %166 = vector.broadcast %cst_73 : f32 to vector<8x96xf32>
      %167 = arith.addf %166, %165 : vector<8x96xf32>
      %168 = arith.divf %166, %167 : vector<8x96xf32>
      %169 = vector.extract_strided_slice %159 {offsets = [0, 96], sizes = [8, 32], strides = [1, 1]} : vector<8x128xf32> to vector<8x32xf32>
      %170 = math.tanh %169 : vector<8x32xf32>
      %171 = vector.extract_strided_slice %168 {offsets = [0, 0], sizes = [8, 32], strides = [1, 1]} : vector<8x96xf32> to vector<8x32xf32>
      %172 = vector.extract_strided_slice %168 {offsets = [0, 32], sizes = [8, 32], strides = [1, 1]} : vector<8x96xf32> to vector<8x32xf32>
      %173 = vector.extract_strided_slice %168 {offsets = [0, 64], sizes = [8, 32], strides = [1, 1]} : vector<8x96xf32> to vector<8x32xf32>
      %174 = arith.mulf %172, %111 : vector<8x32xf32>
      %175 = arith.mulf %171, %170 : vector<8x32xf32>
      %176 = arith.addf %174, %175 : vector<8x32xf32>
      %177 = math.tanh %176 : vector<8x32xf32>
      %178 = arith.mulf %173, %177 : vector<8x32xf32>
      %179 = arith.subf %178, %0 : vector<8x32xf32>
      %180 = vector.broadcast %162 : vector<8x1xf32> to vector<8x32xf32>
      %181 = arith.mulf %180, %179 : vector<8x32xf32>
      %182 = arith.addf %0, %181 : vector<8x32xf32>
      %183 = arith.subf %176, %1 : vector<8x32xf32>
      %184 = vector.broadcast %162 : vector<8x1xf32> to vector<8x32xf32>
      %185 = arith.mulf %184, %183 : vector<8x32xf32>
      %186 = arith.addf %1, %185 : vector<8x32xf32>
      %187 = arith.index_cast %154 : i32 to index
      %c0_74 = arith.constant 0 : index
      %c32_75 = arith.constant 32 : index
      %188 = vector.load %arg8[%187, %c0_74, %c32_75] : memref<8x8x64xf32, #tpu.memory_space<vmem>>, vector<1x8x32xf32>
      %189 = vector.shape_cast %188 : vector<1x8x32xf32> to vector<8x32xf32>
      %190 = vector.shape_cast %182 : vector<8x32xf32> to vector<1x8x32xf32>
      tpu.vector_store %arg8[%187, %c0_74, %c32_75], %190 {strides = array<i32>} : memref<8x8x64xf32, #tpu.memory_space<vmem>>, vector<1x8x32xf32>,
      %c2_i32_76 = arith.constant 2 : i32
      %191 = arith.addi %21, %c2_i32_76 : i32
      %192 = arith.index_cast %c2_i32_76 : i32 to index
      %c0_77 = arith.constant 0 : index
      %c0_78 = arith.constant 0 : index
      %193 = vector.load %arg11[%192, %c0_77, %c0_78] : memref<4x8x128xf32, #tpu.memory_space<vmem>>, vector<1x8x128xf32>
      %194 = vector.shape_cast %193 : vector<1x8x128xf32> to vector<8x128xf32>
      %cst_79 = arith.constant dense<0.000000e+00> : vector<8x128xf32>
      %195 = tpu.matmul %144, %7, %cst_79 {dimension_numbers = #tpu.dot_dimension_numbers<[1], [0], [0], [1], [0, 0, 1, 1], [], []>} : vector<8x32xf32>, vector<32x128xf32>, vector<8x128xf32> -> vector<8x128xf32>
      %196 = arith.addf %194, %195 : vector<8x128xf32>
      %197 = arith.index_cast %191 : i32 to index
      %c0_80 = arith.constant 0 : index
      %c0_81 = arith.constant 0 : index
      %198 = vector.load %arg2[%197, %c0_80, %c0_81] : memref<8x8x1xf32, #tpu.memory_space<vmem>>, vector<1x8x1xf32>
      %199 = vector.shape_cast %198 : vector<1x8x1xf32> to vector<8x1xf32>
      %200 = vector.extract_strided_slice %196 {offsets = [0, 0], sizes = [8, 96], strides = [1, 1]} : vector<8x128xf32> to vector<8x96xf32>
      %201 = arith.negf %200 : vector<8x96xf32>
      %202 = math.exp %201 : vector<8x96xf32>
      %cst_82 = arith.constant 1.000000e+00 : f32
      %203 = vector.broadcast %cst_82 : f32 to vector<8x96xf32>
      %204 = arith.addf %203, %202 : vector<8x96xf32>
      %205 = arith.divf %203, %204 : vector<8x96xf32>
      %206 = vector.extract_strided_slice %196 {offsets = [0, 96], sizes = [8, 32], strides = [1, 1]} : vector<8x128xf32> to vector<8x32xf32>
      %207 = math.tanh %206 : vector<8x32xf32>
      %208 = vector.extract_strided_slice %205 {offsets = [0, 0], sizes = [8, 32], strides = [1, 1]} : vector<8x96xf32> to vector<8x32xf32>
      %209 = vector.extract_strided_slice %205 {offsets = [0, 32], sizes = [8, 32], strides = [1, 1]} : vector<8x96xf32> to vector<8x32xf32>
      %210 = vector.extract_strided_slice %205 {offsets = [0, 64], sizes = [8, 32], strides = [1, 1]} : vector<8x96xf32> to vector<8x32xf32>
      %211 = arith.mulf %209, %148 : vector<8x32xf32>
      %212 = arith.mulf %208, %207 : vector<8x32xf32>
      %213 = arith.addf %211, %212 : vector<8x32xf32>
      %214 = math.tanh %213 : vector<8x32xf32>
      %215 = arith.mulf %210, %214 : vector<8x32xf32>
      %216 = arith.subf %215, %0 : vector<8x32xf32>
      %217 = vector.broadcast %199 : vector<8x1xf32> to vector<8x32xf32>
      %218 = arith.mulf %217, %216 : vector<8x32xf32>
      %219 = arith.addf %0, %218 : vector<8x32xf32>
      %220 = arith.subf %213, %1 : vector<8x32xf32>
      %221 = vector.broadcast %199 : vector<8x1xf32> to vector<8x32xf32>
      %222 = arith.mulf %221, %220 : vector<8x32xf32>
      %223 = arith.addf %1, %222 : vector<8x32xf32>
      %224 = arith.index_cast %191 : i32 to index
      %c0_83 = arith.constant 0 : index
      %c0_84 = arith.constant 0 : index
      %225 = vector.load %arg8[%224, %c0_83, %c0_84] : memref<8x8x64xf32, #tpu.memory_space<vmem>>, vector<1x8x32xf32>
      %226 = vector.shape_cast %225 : vector<1x8x32xf32> to vector<8x32xf32>
      %227 = vector.shape_cast %219 : vector<8x32xf32> to vector<1x8x32xf32>
      tpu.vector_store %arg8[%224, %c0_83, %c0_84], %227 {strides = array<i32>} : memref<8x8x64xf32, #tpu.memory_space<vmem>>, vector<1x8x32xf32>,
      %c3_i32_85 = arith.constant 3 : i32
      %228 = arith.subi %c3_i32_85, %c2_i32_76 : i32
      %229 = arith.addi %32, %228 : i32
      %230 = arith.index_cast %228 : i32 to index
      %c0_86 = arith.constant 0 : index
      %c0_87 = arith.constant 0 : index
      %231 = vector.load %arg12[%230, %c0_86, %c0_87] : memref<4x8x128xf32, #tpu.memory_space<vmem>>, vector<1x8x128xf32>
      %232 = vector.shape_cast %231 : vector<1x8x128xf32> to vector<8x128xf32>
      %cst_88 = arith.constant dense<0.000000e+00> : vector<8x128xf32>
      %233 = tpu.matmul %182, %9, %cst_88 {dimension_numbers = #tpu.dot_dimension_numbers<[1], [0], [0], [1], [0, 0, 1, 1], [], []>} : vector<8x32xf32>, vector<32x128xf32>, vector<8x128xf32> -> vector<8x128xf32>
      %234 = arith.addf %232, %233 : vector<8x128xf32>
      %235 = arith.index_cast %229 : i32 to index
      %c0_89 = arith.constant 0 : index
      %c0_90 = arith.constant 0 : index
      %236 = vector.load %arg2[%235, %c0_89, %c0_90] : memref<8x8x1xf32, #tpu.memory_space<vmem>>, vector<1x8x1xf32>
      %237 = vector.shape_cast %236 : vector<1x8x1xf32> to vector<8x1xf32>
      %238 = vector.extract_strided_slice %234 {offsets = [0, 0], sizes = [8, 96], strides = [1, 1]} : vector<8x128xf32> to vector<8x96xf32>
      %239 = arith.negf %238 : vector<8x96xf32>
      %240 = math.exp %239 : vector<8x96xf32>
      %cst_91 = arith.constant 1.000000e+00 : f32
      %241 = vector.broadcast %cst_91 : f32 to vector<8x96xf32>
      %242 = arith.addf %241, %240 : vector<8x96xf32>
      %243 = arith.divf %241, %242 : vector<8x96xf32>
      %244 = vector.extract_strided_slice %234 {offsets = [0, 96], sizes = [8, 32], strides = [1, 1]} : vector<8x128xf32> to vector<8x32xf32>
      %245 = math.tanh %244 : vector<8x32xf32>
      %246 = vector.extract_strided_slice %243 {offsets = [0, 0], sizes = [8, 32], strides = [1, 1]} : vector<8x96xf32> to vector<8x32xf32>
      %247 = vector.extract_strided_slice %243 {offsets = [0, 32], sizes = [8, 32], strides = [1, 1]} : vector<8x96xf32> to vector<8x32xf32>
      %248 = vector.extract_strided_slice %243 {offsets = [0, 64], sizes = [8, 32], strides = [1, 1]} : vector<8x96xf32> to vector<8x32xf32>
      %249 = arith.mulf %247, %186 : vector<8x32xf32>
      %250 = arith.mulf %246, %245 : vector<8x32xf32>
      %251 = arith.addf %249, %250 : vector<8x32xf32>
      %252 = math.tanh %251 : vector<8x32xf32>
      %253 = arith.mulf %248, %252 : vector<8x32xf32>
      %254 = arith.subf %253, %0 : vector<8x32xf32>
      %255 = vector.broadcast %237 : vector<8x1xf32> to vector<8x32xf32>
      %256 = arith.mulf %255, %254 : vector<8x32xf32>
      %257 = arith.addf %0, %256 : vector<8x32xf32>
      %258 = arith.subf %251, %1 : vector<8x32xf32>
      %259 = vector.broadcast %237 : vector<8x1xf32> to vector<8x32xf32>
      %260 = arith.mulf %259, %258 : vector<8x32xf32>
      %261 = arith.addf %1, %260 : vector<8x32xf32>
      %262 = arith.index_cast %229 : i32 to index
      %c0_92 = arith.constant 0 : index
      %c32_93 = arith.constant 32 : index
      %263 = vector.load %arg8[%262, %c0_92, %c32_93] : memref<8x8x64xf32, #tpu.memory_space<vmem>>, vector<1x8x32xf32>
      %264 = vector.shape_cast %263 : vector<1x8x32xf32> to vector<8x32xf32>
      %265 = vector.shape_cast %257 : vector<8x32xf32> to vector<1x8x32xf32>
      tpu.vector_store %arg8[%262, %c0_92, %c32_93], %265 {strides = array<i32>} : memref<8x8x64xf32, #tpu.memory_space<vmem>>, vector<1x8x32xf32>,
      %c3_i32_94 = arith.constant 3 : i32
      %266 = arith.addi %21, %c3_i32_94 : i32
      %267 = arith.index_cast %c3_i32_94 : i32 to index
      %c0_95 = arith.constant 0 : index
      %c0_96 = arith.constant 0 : index
      %268 = vector.load %arg11[%267, %c0_95, %c0_96] : memref<4x8x128xf32, #tpu.memory_space<vmem>>, vector<1x8x128xf32>
      %269 = vector.shape_cast %268 : vector<1x8x128xf32> to vector<8x128xf32>
      %cst_97 = arith.constant dense<0.000000e+00> : vector<8x128xf32>
      %270 = tpu.matmul %219, %7, %cst_97 {dimension_numbers = #tpu.dot_dimension_numbers<[1], [0], [0], [1], [0, 0, 1, 1], [], []>} : vector<8x32xf32>, vector<32x128xf32>, vector<8x128xf32> -> vector<8x128xf32>
      %271 = arith.addf %269, %270 : vector<8x128xf32>
      %272 = arith.index_cast %266 : i32 to index
      %c0_98 = arith.constant 0 : index
      %c0_99 = arith.constant 0 : index
      %273 = vector.load %arg2[%272, %c0_98, %c0_99] : memref<8x8x1xf32, #tpu.memory_space<vmem>>, vector<1x8x1xf32>
      %274 = vector.shape_cast %273 : vector<1x8x1xf32> to vector<8x1xf32>
      %275 = vector.extract_strided_slice %271 {offsets = [0, 0], sizes = [8, 96], strides = [1, 1]} : vector<8x128xf32> to vector<8x96xf32>
      %276 = arith.negf %275 : vector<8x96xf32>
      %277 = math.exp %276 : vector<8x96xf32>
      %cst_100 = arith.constant 1.000000e+00 : f32
      %278 = vector.broadcast %cst_100 : f32 to vector<8x96xf32>
      %279 = arith.addf %278, %277 : vector<8x96xf32>
      %280 = arith.divf %278, %279 : vector<8x96xf32>
      %281 = vector.extract_strided_slice %271 {offsets = [0, 96], sizes = [8, 32], strides = [1, 1]} : vector<8x128xf32> to vector<8x32xf32>
      %282 = math.tanh %281 : vector<8x32xf32>
      %283 = vector.extract_strided_slice %280 {offsets = [0, 0], sizes = [8, 32], strides = [1, 1]} : vector<8x96xf32> to vector<8x32xf32>
      %284 = vector.extract_strided_slice %280 {offsets = [0, 32], sizes = [8, 32], strides = [1, 1]} : vector<8x96xf32> to vector<8x32xf32>
      %285 = vector.extract_strided_slice %280 {offsets = [0, 64], sizes = [8, 32], strides = [1, 1]} : vector<8x96xf32> to vector<8x32xf32>
      %286 = arith.mulf %284, %223 : vector<8x32xf32>
      %287 = arith.mulf %283, %282 : vector<8x32xf32>
      %288 = arith.addf %286, %287 : vector<8x32xf32>
      %289 = math.tanh %288 : vector<8x32xf32>
      %290 = arith.mulf %285, %289 : vector<8x32xf32>
      %291 = arith.subf %290, %0 : vector<8x32xf32>
      %292 = vector.broadcast %274 : vector<8x1xf32> to vector<8x32xf32>
      %293 = arith.mulf %292, %291 : vector<8x32xf32>
      %294 = arith.addf %0, %293 : vector<8x32xf32>
      %295 = arith.subf %288, %1 : vector<8x32xf32>
      %296 = vector.broadcast %274 : vector<8x1xf32> to vector<8x32xf32>
      %297 = arith.mulf %296, %295 : vector<8x32xf32>
      %298 = arith.addf %1, %297 : vector<8x32xf32>
      %299 = arith.index_cast %266 : i32 to index
      %c0_101 = arith.constant 0 : index
      %c0_102 = arith.constant 0 : index
      %300 = vector.load %arg8[%299, %c0_101, %c0_102] : memref<8x8x64xf32, #tpu.memory_space<vmem>>, vector<1x8x32xf32>
      %301 = vector.shape_cast %300 : vector<1x8x32xf32> to vector<8x32xf32>
      %302 = vector.shape_cast %294 : vector<8x32xf32> to vector<1x8x32xf32>
      tpu.vector_store %arg8[%299, %c0_101, %c0_102], %302 {strides = array<i32>} : memref<8x8x64xf32, #tpu.memory_space<vmem>>, vector<1x8x32xf32>,
      %c3_i32_103 = arith.constant 3 : i32
      %303 = arith.subi %c3_i32_103, %c3_i32_94 : i32
      %304 = arith.addi %32, %303 : i32
      %305 = arith.index_cast %303 : i32 to index
      %c0_104 = arith.constant 0 : index
      %c0_105 = arith.constant 0 : index
      %306 = vector.load %arg12[%305, %c0_104, %c0_105] : memref<4x8x128xf32, #tpu.memory_space<vmem>>, vector<1x8x128xf32>
      %307 = vector.shape_cast %306 : vector<1x8x128xf32> to vector<8x128xf32>
      %cst_106 = arith.constant dense<0.000000e+00> : vector<8x128xf32>
      %308 = tpu.matmul %257, %9, %cst_106 {dimension_numbers = #tpu.dot_dimension_numbers<[1], [0], [0], [1], [0, 0, 1, 1], [], []>} : vector<8x32xf32>, vector<32x128xf32>, vector<8x128xf32> -> vector<8x128xf32>
      %309 = arith.addf %307, %308 : vector<8x128xf32>
      %310 = arith.index_cast %304 : i32 to index
      %c0_107 = arith.constant 0 : index
      %c0_108 = arith.constant 0 : index
      %311 = vector.load %arg2[%310, %c0_107, %c0_108] : memref<8x8x1xf32, #tpu.memory_space<vmem>>, vector<1x8x1xf32>
      %312 = vector.shape_cast %311 : vector<1x8x1xf32> to vector<8x1xf32>
      %313 = vector.extract_strided_slice %309 {offsets = [0, 0], sizes = [8, 96], strides = [1, 1]} : vector<8x128xf32> to vector<8x96xf32>
      %314 = arith.negf %313 : vector<8x96xf32>
      %315 = math.exp %314 : vector<8x96xf32>
      %cst_109 = arith.constant 1.000000e+00 : f32
      %316 = vector.broadcast %cst_109 : f32 to vector<8x96xf32>
      %317 = arith.addf %316, %315 : vector<8x96xf32>
      %318 = arith.divf %316, %317 : vector<8x96xf32>
      %319 = vector.extract_strided_slice %309 {offsets = [0, 96], sizes = [8, 32], strides = [1, 1]} : vector<8x128xf32> to vector<8x32xf32>
      %320 = math.tanh %319 : vector<8x32xf32>
      %321 = vector.extract_strided_slice %318 {offsets = [0, 0], sizes = [8, 32], strides = [1, 1]} : vector<8x96xf32> to vector<8x32xf32>
      %322 = vector.extract_strided_slice %318 {offsets = [0, 32], sizes = [8, 32], strides = [1, 1]} : vector<8x96xf32> to vector<8x32xf32>
      %323 = vector.extract_strided_slice %318 {offsets = [0, 64], sizes = [8, 32], strides = [1, 1]} : vector<8x96xf32> to vector<8x32xf32>
      %324 = arith.mulf %322, %261 : vector<8x32xf32>
      %325 = arith.mulf %321, %320 : vector<8x32xf32>
      %326 = arith.addf %324, %325 : vector<8x32xf32>
      %327 = math.tanh %326 : vector<8x32xf32>
      %328 = arith.mulf %323, %327 : vector<8x32xf32>
      %329 = arith.subf %328, %0 : vector<8x32xf32>
      %330 = vector.broadcast %312 : vector<8x1xf32> to vector<8x32xf32>
      %331 = arith.mulf %330, %329 : vector<8x32xf32>
      %332 = arith.addf %0, %331 : vector<8x32xf32>
      %333 = arith.subf %326, %1 : vector<8x32xf32>
      %334 = vector.broadcast %312 : vector<8x1xf32> to vector<8x32xf32>
      %335 = arith.mulf %334, %333 : vector<8x32xf32>
      %336 = arith.addf %1, %335 : vector<8x32xf32>
      %337 = arith.index_cast %304 : i32 to index
      %c0_110 = arith.constant 0 : index
      %c32_111 = arith.constant 32 : index
      %338 = vector.load %arg8[%337, %c0_110, %c32_111] : memref<8x8x64xf32, #tpu.memory_space<vmem>>, vector<1x8x32xf32>
      %339 = vector.shape_cast %338 : vector<1x8x32xf32> to vector<8x32xf32>
      %340 = vector.shape_cast %332 : vector<8x32xf32> to vector<1x8x32xf32>
      tpu.vector_store %arg8[%337, %c0_110, %c32_111], %340 {strides = array<i32>} : memref<8x8x64xf32, #tpu.memory_space<vmem>>, vector<1x8x32xf32>,
      %c4_i32_112 = arith.constant 4 : i32
      scf.yield %294, %298, %332, %336 : vector<8x32xf32>, vector<8x32xf32>, vector<8x32xf32>, vector<8x32xf32>
    }
    %c2_i32_20 = arith.constant 2 : i32
    %c0_21 = arith.constant 0 : index
    %c0_22 = arith.constant 0 : index
    %16 = vector.load %arg9[%c0_21, %c0_22] : memref<8x64xf32, #tpu.memory_space<vmem>>, vector<8x32xf32>
    tpu.vector_store %arg9[%c0_21, %c0_22], %15#0 {strides = array<i32>} : memref<8x64xf32, #tpu.memory_space<vmem>>, vector<8x32xf32>,
    %c0_23 = arith.constant 0 : index
    %c0_24 = arith.constant 0 : index
    %17 = vector.load %arg10[%c0_23, %c0_24] : memref<8x64xf32, #tpu.memory_space<vmem>>, vector<8x32xf32>
    tpu.vector_store %arg10[%c0_23, %c0_24], %15#1 {strides = array<i32>} : memref<8x64xf32, #tpu.memory_space<vmem>>, vector<8x32xf32>,
    %c0_25 = arith.constant 0 : index
    %c32 = arith.constant 32 : index
    %18 = vector.load %arg9[%c0_25, %c32] : memref<8x64xf32, #tpu.memory_space<vmem>>, vector<8x32xf32>
    tpu.vector_store %arg9[%c0_25, %c32], %15#2 {strides = array<i32>} : memref<8x64xf32, #tpu.memory_space<vmem>>, vector<8x32xf32>,
    %c0_26 = arith.constant 0 : index
    %c32_27 = arith.constant 32 : index
    %19 = vector.load %arg10[%c0_26, %c32_27] : memref<8x64xf32, #tpu.memory_space<vmem>>, vector<8x32xf32>
    tpu.vector_store %arg10[%c0_26, %c32_27], %15#3 {strides = array<i32>} : memref<8x64xf32, #tpu.memory_space<vmem>>, vector<8x32xf32>,
    return
  }
  func.func @transform_0(%arg0: i32) -> (i32, i32, i32) {
    %c0_i32 = arith.constant 0 : i32
    %c0_i32_0 = arith.constant 0 : i32
    %c0_i32_1 = arith.constant 0 : i32
    %c0_i32_2 = arith.constant 0 : i32
    return %c0_i32, %c0_i32_0, %c0_i32_1 : i32, i32, i32
  }
  func.func @transform_1(%arg0: i32) -> (i32, i32, i32) {
    %c0_i32 = arith.constant 0 : i32
    %c0_i32_0 = arith.constant 0 : i32
    %c0_i32_1 = arith.constant 0 : i32
    %c0_i32_2 = arith.constant 0 : i32
    return %c0_i32, %c0_i32_0, %c0_i32_1 : i32, i32, i32
  }
  func.func @transform_2(%arg0: i32) -> (i32, i32, i32) {
    %c0_i32 = arith.constant 0 : i32
    %c0_i32_0 = arith.constant 0 : i32
    %c0_i32_1 = arith.constant 0 : i32
    %c0_i32_2 = arith.constant 0 : i32
    return %c0_i32, %c0_i32_0, %c0_i32_1 : i32, i32, i32
  }
  func.func @transform_3(%arg0: i32) -> (i32, i32, i32) {
    %c0_i32 = arith.constant 0 : i32
    %c0_i32_0 = arith.constant 0 : i32
    %c0_i32_1 = arith.constant 0 : i32
    %c0_i32_2 = arith.constant 0 : i32
    return %c0_i32, %c0_i32_0, %c0_i32_1 : i32, i32, i32
  }
  func.func @transform_4(%arg0: i32) -> (i32, i32, i32) {
    %c0_i32 = arith.constant 0 : i32
    %c0_i32_0 = arith.constant 0 : i32
    %c0_i32_1 = arith.constant 0 : i32
    %c0_i32_2 = arith.constant 0 : i32
    return %c0_i32, %c0_i32_0, %c0_i32_1 : i32, i32, i32
  }
  func.func @transform_5(%arg0: i32) -> (i32, i32) {
    %c0_i32 = arith.constant 0 : i32
    %c0_i32_0 = arith.constant 0 : i32
    %c0_i32_1 = arith.constant 0 : i32
    return %c0_i32, %c0_i32_0 : i32, i32
  }
  func.func @transform_6(%arg0: i32) -> (i32, i32) {
    %c0_i32 = arith.constant 0 : i32
    %c0_i32_0 = arith.constant 0 : i32
    %c0_i32_1 = arith.constant 0 : i32
    return %c0_i32, %c0_i32_0 : i32, i32
  }
  func.func @transform_7(%arg0: i32) -> (i32, i32, i32) {
    %c0_i32 = arith.constant 0 : i32
    %c0_i32_0 = arith.constant 0 : i32
    %c0_i32_1 = arith.constant 0 : i32
    %c0_i32_2 = arith.constant 0 : i32
    return %c0_i32, %c0_i32_0, %c0_i32_1 : i32, i32, i32
  }
  func.func @transform_8(%arg0: i32) -> (i32, i32) {
    %c0_i32 = arith.constant 0 : i32
    %c0_i32_0 = arith.constant 0 : i32
    %c0_i32_1 = arith.constant 0 : i32
    return %c0_i32, %c0_i32_0 : i32, i32
  }
  func.func @transform_9(%arg0: i32) -> (i32, i32) {
    %c0_i32 = arith.constant 0 : i32
    %c0_i32_0 = arith.constant 0 : i32
    %c0_i32_1 = arith.constant 0 : i32
    return %c0_i32, %c0_i32_0 : i32, i32
  }
}

</mosaic_0001>

<bundles_post_ra>
// kernel: tpu_custom_call.1
= control target key start
LH: loop header
LB: loop body
LE: loop exit
PB: predicated region body
PF: predicated region fallthrough
CT: control target
= control target key end

     0   :  { %15 = vsyncpa [#allocation5], 0  ;;  %s2603_s0 = inlined_call_operand.vmem [shape: f32[8,8,32], index: 0, kind: input, shape index: {}]   ;;  %s2604_s1 = inlined_call_operand.vmem [shape: f32[8,8,1], index: 1, kind: input, shape index: {}]   ;;  %s2605_s2 = inlined_call_operand.hbm [shape: f32[2,32,128], index: 2, kind: input, shape index: {}]   ;;  %s2606_s3 = inlined_call_operand.hbm [shape: f32[2,32,128], index: 3, kind: input, shape index: {}]   ;;  %s2607_s4 = inlined_call_operand.vmem [shape: f32[2,1,128], index: 4, kind: input, shape index: {}]   ;;  %s2608_s5 = inlined_call_operand.vmem [shape: f32[8,32], index: 5, kind: input, shape index: {}]   ;;  %s2609_s6 = inlined_call_operand.vmem [shape: f32[8,32], index: 6, kind: input, shape index: {}]   ;;  %s2610_s7 = inlined_call_operand.hbm [shape: f32[8,8,64], index: 7, kind: output, shape index: {0}]   ;;  %s2611_s8 = inlined_call_operand.hbm [shape: f32[8,64], index: 8, kind: output, shape index: {1}]   ;;  %s2612_s9 = inlined_call_operand.hbm [shape: f32[8,64], index: 9, kind: output, shape index: {2}]  }
   0x1   :  { %16 = vsyncpa [#allocation8], 0 }
   0x2   :  { %17 = vsyncpa [#allocation6], 0 }
   0x3   :  { %18 = vsyncpa [#allocation11], 0  ;;  %s2102_s30 = smov [#allocation4]   ;;  %s1944_s13 = scalar_lea.hbm %s2605_s2, 1024 }
   0x4   :  { %s28_s10 = sshll.u32 %s2102_s30, 4  ;;  %p1945_p0 = scmp.ne.s32.totalorder %s2605_s2, %s1944_s13  ;;  %s29_s10 = int_to_ptr.vmem [resolvable:$true] %s28_s10 }
   0x5   :  { %p1948_p1 = scmp.lt.u32.totalorder %s1944_s13, %s2605_s2 }
   0x7   :  { %p1950_p2 = pnand %p1948_p1, %p1945_p0 }
   0x9   :  { %1953 = shalt.err (!%p1950_p2)
}
   0xa   :  { %s1954_s18 = scalar_lea.vmem %s29_s10, 1024  ;;  %p1959_p4 = scmp.lt.s32.totalorder %s29_s10, %s29_s10 }
   0xb   :  { %p1955_p3 = scmp.ne.s32.totalorder %s29_s10, %s1954_s18  ;;  %p1960_p5 = scmp.lt.s32.totalorder %s1954_s18, %s1954_s18 }
   0xd   :  { %p1961_p6 = por %p1960_p5, %p1959_p4 }
   0xf   :  { %p1962_p7 = pnand %p1961_p6, %p1955_p3 }
  0x11   :  { %1965 = shalt.err (!%p1962_p7)
}
  0x12   :  { %s2103_s19 = smov 128   ;;  %s2104_s20 = smov 8  }
  0x13   :  { %34 = dma.hbm_to_vmem [thread:$0]  %s2605_s2, 1024, %s29_s10, [#allocation5], %s2103_s19, %s2103_s19, %s2104_s20  }
  0x14   :  { %s2105_s23 = smov [#allocation7]   ;;  %s1966_s27 = scalar_lea.hbm %s2606_s3, 1024 }
  0x15   :  { %s40_s24 = sshll.u32 %s2105_s23, 4  ;;  %p1967_p8 = scmp.ne.s32.totalorder %s2606_s3, %s1966_s27  ;;  %s41_s24 = int_to_ptr.vmem [resolvable:$true] %s40_s24 }
  0x16   :  { %p1970_p9 = scmp.lt.u32.totalorder %s1966_s27, %s2606_s3 }
  0x18   :  { %p1972_p10 = pnand %p1970_p9, %p1967_p8 }
  0x1a   :  { %1975 = shalt.err (!%p1972_p10)
}
  0x1b   :  { %s1976_s12 = scalar_lea.vmem %s41_s24, 1024  ;;  %p1981_p12 = scmp.lt.s32.totalorder %s41_s24, %s41_s24 }
  0x1c   :  { %p1977_p11 = scmp.ne.s32.totalorder %s41_s24, %s1976_s12  ;;  %p1982_p13 = scmp.lt.s32.totalorder %s1976_s12, %s1976_s12 }
  0x1e   :  { %p1983_p0 = por %p1982_p13, %p1981_p12 }
  0x20   :  { %p1984_p1 = pnand %p1983_p0, %p1977_p11 }
  0x22   :  { %1987 = shalt.err (!%p1984_p1)
}
  0x23   :  { %46 = dma.hbm_to_vmem [thread:$0]  %s2606_s3, 1024, %s41_s24, [#allocation8], %s2103_s19, %s2103_s19, %s2104_s20  }
  0x24   :  { %2074 = dma.done.wait [#allocation5], 1024  }
  0x25   :  { %2075 = vsyncadd [#allocation5], 4294966272 }
  0x26   :  { %2076 = dma.done.wait [#allocation8], 1024  }
  0x27   :  { %2077 = vsyncadd [#allocation8], 4294966272  ;;  %v2200_v0 = vld [vmem:[%s2608_s5] sm:$0xff]   ;;  %v2209_v3 = vld [vmem:[#allocation4 + $0x8] sm:$0xff]  ;;  %s2261_s18 = smov 0  }
  0x28   :  { %v2205_v1 = vld [vmem:[%s2609_s6] sm:$0xff]   ;;  %v2211_v4 = vld [vmem:[#allocation4 + $0x10] sm:$0xff]  ;;  %v2213_v5 = vld [vmem:[#allocation4 + $0x18] sm:$0xff]  ;;  %v2614_v21 = vmov %v2200_v0  ;;  %v2616_v23 = vmov %v2200_v0 }
  0x29   :  { %v2207_v2 = vld [vmem:[#allocation4] sm:$0xff]  ;;  %v2217_v7 = vld [vmem:[#allocation4 + $0x28] sm:$0xff]  ;;  %v2219_v8 = vld [vmem:[#allocation4 + $0x30] sm:$0xff]  ;;  %v2613_v20 = vmov %v2205_v1  ;;  %v2615_v22 = vmov %v2205_v1 }
  0x2a   :  { %v2215_v6 = vld [vmem:[#allocation4 + $0x20] sm:$0xff]  ;;  %v2221_v9 = vld [vmem:[#allocation4 + $0x38] sm:$0xff]  ;;  %v2225_v11 = vld [vmem:[#allocation7 + $0x8] sm:$0xff] }
  0x2b   :  { %v2223_v10 = vld [vmem:[#allocation7] sm:$0xff]  ;;  %v2227_v12 = vld [vmem:[#allocation7 + $0x10] sm:$0xff]  ;;  %v2229_v13 = vld [vmem:[#allocation7 + $0x18] sm:$0xff] }
  0x2c   :  { %v2231_v14 = vld [vmem:[#allocation7 + $0x20] sm:$0xff]  ;;  %v2233_v15 = vld [vmem:[#allocation7 + $0x28] sm:$0xff]  ;;  %v2235_v16 = vld [vmem:[#allocation7 + $0x30] sm:$0xff] }
  0x2d   :  { %v2237_v17 = vld [vmem:[#allocation7 + $0x38] sm:$0xff]  ;;  %v2242_v18 = vld [vmem:[%s2607_s4] ss:$0 sm:$0xff]  ;;  %v2247_v19 = vld [vmem:[%s2607_s4 + $0x1] ss:$0 sm:$0xff] }
  0x2e LB: > { %v1767_v24 = vpack.c.bf16 %v2217_v7, %v2215_v6  ;;  %v1759_v25 = vpack.c.bf16 %v2209_v3, %v2207_v2  ;;  %v1771_v26 = vpack.c.bf16 %v2221_v9, %v2219_v8  ;;  %v1763_v27 = vpack.c.bf16 %v2213_v5, %v2211_v4  ;;  %s207_s4 = ssub.s32 1, %s2100_s18  ;;  %s2282_s21 = sshll.u32 %s2100_s18, 5  ;;  %s2100_s18 = sphi %s2261_s18, %s87_s18   ;;  %v2096_v23 = vphi %v2616_v23, %v2620_v23   ;;  %v2092_v22 = vphi %v2615_v22, %v2619_v22   ;;  %v2088_v21 = vphi %v2614_v21, %v2618_v21   ;;  %v2084_v20 = vphi %v2613_v20, %v2617_v20  }
  0x2f   : > { %vm105_vm0 = vcmask 261120   ;;  %s2284_s22 = sshll.u32 %s207_s4, 5  ;;  %s94_s25 = scalar_lea.vmem %s2603_s0, %s2282_s21  ;;  %v2299_v31 = vpack.c.bf16 %v2233_v15, %v2231_v14  ;;  %v2107_v33 = vmov 0.0|0.0   ;;  %v2305_v35 = vpack.c.bf16 %v2225_v11, %v2223_v10 }
  0x30   : > { %1768 = vmatprep.subr.bf16.mxu1 %v1767_v24  ;;  %1760 = vmatprep.subr.bf16.mxu0 %v1759_v25  ;;  %s210_s28 = scalar_lea.vmem %s2603_s0, %s2284_s22  ;;  %v95_v28 = vld [vmem:[%s94_s25] sm:$0xff]  ;;  %s2106_s29 = smov 32   ;;  %v96_v32 = vld [vmem:[%s94_s25 + $0x8] sm:$0xff]  ;;  %v97_v36 = vld [vmem:[%s94_s25 + $0x10] sm:$0xff]  ;;  %v2313_v38 = vpack.c.bf16 %v2237_v17, %v2235_v16  ;;  %v2319_v40 = vpack.c.bf16 %v2229_v13, %v2227_v12  ;;  %vm2108_vm1 = vmmov 0   ;;  %v2109_v41 = vmov 0.0  }
  0x31   : > { %1770 = vmatpush3.bf16.msra.mxu1 %v1767_v24  ;;  %1762 = vmatpush3.bf16.msra.mxu0 %v1759_v25  ;;  %v211_v29 = vld [vmem:[%s210_s28] sm:$0xff]  ;;  %v212_v30 = vld [vmem:[%s210_s28 + $0x8] sm:$0xff]  ;;  %v213_v34 = vld [vmem:[%s210_s28 + $0x10] sm:$0xff]  ;;  %s2369_s12 = scalar_lea.vmem %s2604_s1, %s2284_s22  ;;  %s2376_s13 = scalar_lea.vmem %s2604_s1, %s2282_s21  ;;  %vm588_vm2 = vcmask 523520  }
  0x32   : > { %1772 = vmatprep.subr.bf16.mxu1 %v1771_v26  ;;  %1764 = vmatprep.subr.bf16.mxu0 %v1763_v27  ;;  %v214_v37 = vld [vmem:[%s210_s28 + $0x18] sm:$0xff]  ;;  %s2111_s14 = smov 64   ;;  %s2409_s15 = scalar_lea.vmem [#allocation9], %s2282_s21 }
  0x33   : > { %1651 = vmatprep.mubr.msk.f32.mxu0 %vm105_vm0, %v95_v28  ;;  %544 = vrot.lane.b32.xlu1 %v2084_v20, %s2106_s29  ;;  %v98_v39 = vld [vmem:[%s94_s25 + $0x18] sm:$0xff]  ;;  %s2112_s16 = smov 96   ;;  %s1443_s3 = scalar_lea.vmem [#allocation9], %s2284_s22 }
  0x34   : > { %1665 = vmatprep.mubr.msk.f32.mxu1 %vm105_vm0, %v211_v29  ;;  %v1526_v24 = vld [vmem:[%s2369_s12 + $0x18] sm:$0xff]  ;;  %s87_s18 = sadd.s32 1, %s2100_s18  }
  0x35   : > { %1774 = vmatpush3.bf16.msra.mxu1 %v1771_v26  ;;  %1766 = vmatpush3.bf16.msra.mxu0 %v1763_v27  ;;  %p84_p2 = scmp.ge.s32.totalorder %s87_s18, 2  }
  0x36   : > { %1781 = vmatprep.subr.bf16.mxu1 %v2107_v33  ;;  %1775 = vmatprep.subr.bf16.mxu0 %v2107_v33  ;;  %s2113_s5 = smov (%p84_p2), 32   ;;  %s2114_s6 = smov (%p84_p2), [#allocation9]  }
  0x37   :  { %s1389_s17 = sshll.u32 (%p84_p2), %s2114_s6, 4  ;;  %s1390_s17 = int_to_ptr.vmem [resolvable:$true] %s1389_s17 }
  0x38   : > { %1666 = vmatmul.mubr.msk.f32.vlgmr.msra.gmra.mrb[0].mxu1 %vm105_vm0, %v212_v30  ;;  %1652 = vmatmul.mubr.msk.f32.vlgmr.msra.gmra.mrb[0].mxu0 %vm105_vm0, %v96_v32  ;;  %s1988_s4 = scalar_lea.vmem (%p84_p2), %s1390_s17, 1024  ;;  %p1993_p4 = scmp.lt.s32.totalorder (%p84_p2), %s1390_s17, %s1390_s17 }
  0x39   : > { %1783 = vmatpush3.bf16.msra.mxu1 %v2299_v31  ;;  %1668 = vmatprep.mubr.msk.f32.mxu1 %vm105_vm0, %v213_v34  ;;  %p1989_p3 = scmp.ne.s32.totalorder (%p84_p2), %s1390_s17, %s1988_s4  ;;  %p1994_p5 = scmp.lt.s32.totalorder (%p84_p2), %s1988_s4, %s1988_s4 }
  0x3a   : > { %1784 = vmatprep.subr.bf16.mxu1 %v2107_v33  ;;  %1777 = vmatpush3.bf16.msra.mxu0 %v2305_v35 }
  0x3b   : > { %1654 = vmatprep.mubr.msk.f32.mxu0 %vm105_vm0, %v97_v36  ;;  %1778 = vmatprep.subr.bf16.mxu0 %v2107_v33  ;;  %p1995_p6 = por (%p84_p2), %p1994_p5, %p1993_p4 }
  0x3c   : > { %1669 = vmatmul.mubr.msk.f32.gmra.mrb[2].mxu1 %vm105_vm0, %v214_v37  ;;  %1655 = vmatmul.mubr.msk.f32.gmra.mrb[2].mxu0 %vm105_vm0, %v98_v39 }
  0x3d   : > { %1786 = vmatpush3.bf16.msra.mxu1 %v2313_v38  ;;  %1690 = vmatprep.mubr.msk.f32.mxu1 %vm2108_vm1, %v2109_v41  ;;  %p1996_p7 = pnand (%p84_p2), %p1995_p6, %p1989_p3 }
  0x3e   : > { %1780 = vmatpush3.bf16.msra.mxu0 %v2319_v40  ;;  %1679 = vmatprep.mubr.msk.f32.mxu0 %vm2108_vm1, %v2109_v41 }
  0x3f   : > { %1793 = vmatprep.subr.bf16.mxu1 %v2107_v33  ;;  %1787 = vmatprep.subr.bf16.mxu0 %v2107_v33 }
  0x40   : > { %1691 = vmatmul.mubr.msk.f32.vlgmr.msra.gmra.mrb[4].mxu1 %vm105_vm0, %v2088_v21 }
  0x41   : > { %1680 = vmatmul.mubr.msk.f32.vlgmr.msra.gmra.mrb[4].mxu0 %vm105_vm0, %v2096_v23  ;;  %1795 = vmatpush3.bf16.msra.mxu1 %v2299_v31  ;;  %v2110_v23 = vmov 0  }
  0x42   : > { %1796 = vmatprep.subr.bf16.mxu1 %v2107_v33  ;;  %1789 = vmatpush3.bf16.msra.mxu0 %v2305_v35 }
  0x43   : > { %1712 = vmatprep.mubr.msk.f32.mxu1 %vm2108_vm1, %v2109_v41  ;;  %1790 = vmatprep.subr.bf16.mxu0 %v2107_v33 }
  0x44   : > { %1701 = vmatprep.mubr.msk.f32.mxu0 %vm2108_vm1, %v2109_v41  ;;  %1878 = vset.pattern.permute.xlu0 %v2110_v23 }
  0x45   : > { %1798 = vmatpush3.bf16.msra.mxu1 %v2313_v38  ;;  %1879 = vset.pattern.permute.xlu1 %v2110_v23 }
  0x46   : > { %1792 = vmatpush3.bf16.msra.mxu0 %v2319_v40  ;;  %1805 = vmatprep.subr.bf16.mxu1 %v2107_v33 }
  0x47   : > { %1799 = vmatprep.subr.bf16.mxu0 %v2107_v33 }
  0xa5   : > { %v545_v32 = vpop.permute.xlu1 %544 }
 0x10b   : > { %v2347_v42 = vpop.f32.mrb[0].mxu1  ;;  %v2349_v43 = vpop.f32.mrb[0].mxu0 }
 0x10c   : > { %v2351_v44 = vpop.f32.mrb[1].mxu1  ;;  %v184_v45 = vpop.f32.mrb[1].mxu0 }
 0x10d   : > { %v185_v50 = vadd.f32 %v2242_v18, %v184_v45 }
 0x10f   : > { %v1670_v46 = vpop.f32.mrb[2].mxu1  ;;  %v2353_v47 = vpop.f32.mrb[2].mxu0 }
 0x110   : > { %v2355_v48 = vpop.f32.mrb[3].mxu1  ;;  %v2357_v49 = vpop.f32.mrb[3].mxu0  ;;  %v315_v51 = vadd.f32 %v1670_v46, %v2247_v19 }
 0x113   : > { %v528_v52 = vpop.f32.mrb[4].mxu1 }
 0x114   : > { %v532_v53 = vadd.f32 %v528_v52, %v315_v51  ;;  %v1692_v54 = vpop.f32.mrb[5].mxu1  ;;  %v392_v55 = vpop.f32.mrb[4].mxu0 }
 0x115   : > { %v396_v56 = vadd.f32 %v392_v55, %v185_v50  ;;  %v1681_v57 = vpop.f32.mrb[5].mxu0 }
 0x116   : > { %1880 = vtanh.f32 %v532_v53  ;;  %v1527_v60 = vmul.f32 -1.442695, %v532_v53 }
 0x117   : > { %1882 = vtanh.f32 %v396_v56  ;;  %v1522_v61 = vmul.f32 -1.442695, %v396_v56 }
 0x118   : > { %1884 = vpow2.f32 %v1527_v60 }
 0x119   : > { %1886 = vpow2.f32 %v1522_v61 }
 0x120   : > { %v1881_v58 = vpop.eup %1880 }
 0x121   : > { %549 = vrot.lane.b32.xlu0 %v1881_v58, %s2106_s29  ;;  %v1883_v59 = vpop.eup %1882 }
 0x122   : > { %v1885_v62 = vpop.eup %1884 }
 0x123   : > { %v1887_v63 = vpop.eup %1886  ;;  %v539_v20 = vadd.f32 1.0, %v1885_v62 }
 0x124   : > { %v402_v21 = vadd.f32 1.0, %v1887_v63 }
 0x125   : > { %412 = vrot.lane.b32.xlu0 %v1883_v59, %s2106_s29  ;;  %1888 = vrcp.f32 %v539_v20 }
 0x126   : > { %1890 = vrcp.f32 %v402_v21 }
 0x129   : > { %407 = vrot.lane.b32.xlu0 %v2092_v22, %s2106_s29  ;;  %v398_v22 = vld [vmem:[%s2376_s13] sm:$0xff] }
 0x12d   : > { %567 = vperm.xlu0 %1878, %v1526_v24  }
 0x12f   : > { %v1889_v25 = vpop.eup %1888 }
 0x130   : > { %v1891_v28 = vpop.eup %1890  ;;  %v547_v34 = vmul.f32 %v1889_v25, %v545_v32 }
 0x131   : > { %434 = vperm.xlu0 %1878, %v398_v22  }
 0x193   : > { %v550_v26 = vpop.permute.xlu0 %549 }
 0x194   : > { %v552_v27 = vmul.f32 %v1889_v25, %v550_v26 }
 0x196   : > { %554 = vrot.lane.b32.xlu1 %v552_v27, %s2106_s29 }
 0x197   : > { %v413_v29 = vpop.permute.xlu0 %412 }
 0x198   : > { %v415_v30 = vmul.f32 %v1891_v28, %v413_v29 }
 0x19a   : > { %417 = vrot.lane.b32.xlu1 %v415_v30, %s2106_s29 }
 0x19b   : > { %v408_v39 = vpop.permute.xlu0 %407 }
 0x19c   : > { %v410_v46 = vmul.f32 %v1891_v28, %v408_v39  ;;  %v1534_v39 = vld [vmem:[%s2376_s13 + $0x8] sm:$0xff] }
 0x1ac   : > { %v568_v57 = vpop.permute.xlu0 %567 }
 0x1b0   : > { %v435_v62 = vpop.permute.xlu0 %434 }
 0x208   : > { %v555_v36 = vpop.permute.xlu1 %554 }
 0x209   : > { %v557_v37 = vadd.f32 %v555_v36, %v547_v34  ;;  %v1542_v36 = vld [vmem:[%s2369_s12 + $0x10] sm:$0xff] }
 0x20b   : > { %1892 = vtanh.f32 %v557_v37 }
 0x20c   : > { %v418_v45 = vpop.permute.xlu1 %417 }
 0x20d   : > { %v420_v50 = vadd.f32 %v418_v45, %v410_v46 }
 0x20f   : > { %1894 = vtanh.f32 %v420_v50 }
 0x215   : > { %v1893_v51 = vpop.eup %1892 }
 0x216   : > { %560 = vrot.lane.b32.xlu1 %v1893_v51, %s2106_s29  ;;  %v190_v51 = vadd.f32 %v2349_v43, %v2242_v18 }
 0x219   : > { %v1895_v52 = vpop.eup %1894 }
 0x21a   : > { %428 = vrot.lane.b32.xlu1 %v2200_v0, %s2111_s14 }
 0x21e   : > { %423 = vrot.lane.b32.xlu1 %v1895_v52, %s2106_s29 }
 0x288   : > { %v561_v53 = vpop.permute.xlu1 %560 }
 0x289   : > { %v563_v54 = vmul.f32 %v1889_v25, %v561_v53 }
 0x28c   : > { %v2385_v55 = vpop.permute.xlu1 %428 }
 0x28d   : > { %v564_v56 = vsub.f32 %v563_v54, %v2385_v55 }
 0x28f   : > { %v570_v58 = vmul.f32 %v568_v57, %v564_v56 }
 0x290   : > { %v424_v59 = vpop.permute.xlu1 %423 }
 0x291   : > { %v426_v60 = vmul.f32 %v1891_v28, %v424_v59  ;;  %572 = vrot.lane.b32.xlu0 %v570_v58, %s2111_s14 }
 0x293   : > { %v431_v61 = vsub.f32 %v426_v60, %v2385_v55 }
 0x295   : > { %444 = vrot.lane.b32.xlu0 %v2205_v1, %s2106_s29  ;;  %v437_v63 = vmul.f32 %v435_v62, %v431_v61 }
 0x297   : > { %439 = vrot.lane.b32.xlu1 %v437_v63, %s2111_s14 }
 0x303   : > { %v573_v20 = vpop.permute.xlu0 %572 }
 0x304   : > { %v2394_v21 = vadd.f32 %v573_v20, %v2200_v0 }
 0x306   : > { %1713 = vmatmul.mubr.msk.f32.vlgmr.msra.gmra.mrb[6].mxu1 %vm105_vm0, %v2394_v21 }
 0x307   : > { %v2398_v23 = vpop.permute.xlu0 %444  ;;  %1807 = vmatpush3.bf16.msra.mxu1 %v2299_v31  ;;  %1734 = vmatprep.mubr.msk.f32.mxu1 %vm2108_vm1, %v2109_v41 }
 0x308   : > { %v576_v24 = vsub.f32 %v557_v37, %v2398_v23  ;;  %1808 = vmatprep.subr.bf16.mxu1 %v2107_v33  ;;  %v447_v27 = vsub.f32 %v420_v50, %v2398_v23  ;;  %v310_v37 = vadd.f32 %v2247_v19, %v2355_v48 }
 0x309   : > { %v440_v22 = vpop.permute.xlu1 %439 }
 0x30a   : > { %v442_v25 = vadd.f32 %v440_v22, %v2200_v0  ;;  %v577_v26 = vmul.f32 %v576_v24, %v568_v57  ;;  %v448_v28 = vmul.f32 %v447_v27, %v435_v62 }
 0x30b   : > { %1810 = vmatpush3.bf16.msra.mxu1 %v2313_v38 }
 0x30c   : > { %455 = vst.msk [vmem:[%s2409_s15] sm:$0xff] %vm105_vm0, %v442_v25  ;;  %579 = vrot.lane.b32.xlu1 %v577_v26, %s2112_s16  ;;  %1702 = vmatmul.mubr.msk.f32.vlgmr.msra.gmra.mrb[6].mxu0 %vm105_vm0, %v442_v25 }
 0x30d   : > { %1801 = vmatpush3.bf16.msra.mxu0 %v2305_v35  ;;  %1723 = vmatprep.mubr.msk.f32.mxu0 %vm2108_vm1, %v2109_v41 }
 0x30e   : > { %1802 = vmatprep.subr.bf16.mxu0 %v2107_v33  ;;  %1817 = vmatprep.subr.bf16.mxu1 %v2107_v33 }
 0x310   : > { %450 = vrot.lane.b32.xlu1 %v448_v28, %s2112_s16 }
 0x311   : > { %1804 = vmatpush3.bf16.msra.mxu0 %v2319_v40 }
 0x312   : > { %1811 = vmatprep.subr.bf16.mxu0 %v2107_v33 }
 0x37e   : > { %v580_v29 = vpop.permute.xlu1 %579 }
 0x37f   : > { %v582_v30 = vadd.f32 %v580_v29, %v2205_v1 }
 0x381   : > { %806 = vrot.lane.b32.xlu1 %v582_v30, %s2106_s29 }
 0x382   : > { %v451_v32 = vpop.permute.xlu1 %450 }
 0x383   : > { %v453_v34 = vadd.f32 %v451_v32, %v2205_v1 }
 0x385   : > { %678 = vrot.lane.b32.xlu1 %v453_v34, %s2106_s29 }
 0x389   : > { %829 = vperm.xlu1 %1879, %v1542_v36  }
 0x38d   : > { %701 = vperm.xlu1 %1879, %v1534_v39  }
 0x3d9   : > { %v790_v45 = vpop.f32.mrb[6].mxu1 }
 0x3da   : > { %v794_v46 = vadd.f32 %v790_v45, %v310_v37  ;;  %v1714_v50 = vpop.f32.mrb[7].mxu1 }
 0x3dc   : > { %1896 = vtanh.f32 %v794_v46  ;;  %v1543_v48 = vmul.f32 -1.442695, %v794_v46 }
 0x3df   : > { %v662_v52 = vpop.f32.mrb[6].mxu0 }
 0x3e0   : > { %v666_v53 = vadd.f32 %v662_v52, %v190_v51  ;;  %v1703_v54 = vpop.f32.mrb[7].mxu0 }
 0x3e2   : > { %1898 = vtanh.f32 %v666_v53  ;;  %v1535_v58 = vmul.f32 -1.442695, %v666_v53 }
 0x3e3   : > { %1900 = vpow2.f32 %v1543_v48 }
 0x3e4   : > { %1902 = vpow2.f32 %v1535_v58 }
 0x3e6   : > { %v1897_v56 = vpop.eup %1896 }
 0x3e7   : > { %811 = vrot.lane.b32.xlu0 %v1897_v56, %s2106_s29 }
 0x3ec   : > { %v1899_v57 = vpop.eup %1898 }
 0x3ed   : > { %683 = vrot.lane.b32.xlu0 %v1899_v57, %s2106_s29  ;;  %v1901_v59 = vpop.eup %1900 }
 0x3ee   : > { %v801_v60 = vadd.f32 1.0, %v1901_v59  ;;  %v1903_v61 = vpop.eup %1902 }
 0x3ef   : > { %v673_v62 = vadd.f32 1.0, %v1903_v61 }
 0x3f0   : > { %1904 = vrcp.f32 %v801_v60 }
 0x3f1   : > { %1906 = vrcp.f32 %v673_v62 }
 0x3f3   : > { %v807_v26 = vpop.permute.xlu1 %806 }
 0x3f7   : > { %v679_v30 = vpop.permute.xlu1 %678 }
 0x3fa   : > { %v1905_v43 = vpop.eup %1904 }
 0x3fb   : > { %v1907_v24 = vpop.eup %1906  ;;  %v809_v27 = vmul.f32 %v1905_v43, %v807_v26 }
 0x3fc   : > { %v681_v32 = vmul.f32 %v1907_v24, %v679_v30 }
 0x408   : > { %v830_v51 = vpop.permute.xlu1 %829 }
 0x40c   : > { %v702_v59 = vpop.permute.xlu1 %701 }
 0x459   : > { %v812_v63 = vpop.permute.xlu0 %811 }
 0x45a   : > { %v814_v20 = vmul.f32 %v1905_v43, %v812_v63 }
 0x45c   : > { %816 = vrot.lane.b32.xlu0 %v814_v20, %s2106_s29 }
 0x45f   : > { %v684_v22 = vpop.permute.xlu0 %683 }
 0x460   : > { %v686_v25 = vmul.f32 %v1907_v24, %v684_v22 }
 0x462   : > { %688 = vrot.lane.b32.xlu0 %v686_v25, %s2106_s29 }
 0x4ce   : > { %v817_v28 = vpop.permute.xlu0 %816 }
 0x4cf   : > { %v819_v29 = vadd.f32 %v817_v28, %v809_v27  ;;  %v1550_v27 = vld [vmem:[%s2376_s13 + $0x10] sm:$0xff] }
 0x4d1   : > { %1908 = vtanh.f32 %v819_v29  ;;  %v838_v52 = vsub.f32 %v819_v29, %v2398_v23 }
 0x4d3   : > { %v839_v57 = vmul.f32 %v838_v52, %v830_v51 }
 0x4d4   : > { %v689_v34 = vpop.permute.xlu0 %688 }
 0x4d5   : > { %v691_v36 = vadd.f32 %v689_v34, %v681_v32 }
 0x4d7   : > { %1910 = vtanh.f32 %v691_v36  ;;  %v710_v48 = vsub.f32 %v691_v36, %v2398_v23 }
 0x4d9   : > { %v711_v61 = vmul.f32 %v710_v48, %v702_v59 }
 0x4db   : > { %v1909_v37 = vpop.eup %1908 }
 0x4dc   : > { %822 = vrot.lane.b32.xlu0 %v1909_v37, %s2106_s29 }
 0x4e1   : > { %v1911_v39 = vpop.eup %1910 }
 0x4e2   : > { %694 = vrot.lane.b32.xlu0 %v1911_v39, %s2106_s29 }
 0x54e   : > { %v823_v45 = vpop.permute.xlu0 %822 }
 0x54f   : > { %v825_v46 = vmul.f32 %v1905_v43, %v823_v45 }
 0x551   : > { %v826_v50 = vsub.f32 %v825_v46, %v2385_v55 }
 0x553   : > { %v832_v53 = vmul.f32 %v830_v51, %v826_v50 }
 0x554   : > { %v695_v54 = vpop.permute.xlu0 %694 }
 0x555   : > { %v697_v56 = vmul.f32 %v1907_v24, %v695_v54  ;;  %834 = vrot.lane.b32.xlu1 %v832_v53, %s2111_s14 }
 0x557   : > { %v698_v58 = vsub.f32 %v697_v56, %v2385_v55 }
 0x559   : > { %841 = vrot.lane.b32.xlu1 %v839_v57, %s2112_s16  ;;  %v704_v60 = vmul.f32 %v702_v59, %v698_v58 }
 0x55b   : > { %706 = vrot.lane.b32.xlu0 %v704_v60, %s2111_s14 }
 0x55d   : > { %713 = vrot.lane.b32.xlu1 %v711_v61, %s2112_s16 }
 0x5c7   : > { %v835_v62 = vpop.permute.xlu1 %834 }
 0x5c8   : > { %v2448_v43 = vadd.f32 %v835_v62, %v2200_v0 }
 0x5ca   : > { %1735 = vmatmul.mubr.msk.f32.vlgmr.msra.gmra.mrb[8].mxu1 %vm105_vm0, %v2448_v43 }
 0x5cb   : > { %v842_v63 = vpop.permute.xlu1 %841  ;;  %1819 = vmatpush3.bf16.msra.mxu1 %v2299_v31  ;;  %1756 = vmatprep.mubr.msk.f32.mxu1 %vm2108_vm1, %v2109_v41  ;;  %v1558_v31 = vld [vmem:[%s2369_s12 + $0x8] sm:$0xff] }
 0x5cc   : > { %v844_v20 = vadd.f32 %v842_v63, %v2205_v1  ;;  %1820 = vmatprep.subr.bf16.mxu1 %v2107_v33 }
 0x5cd   : > { %v707_v24 = vpop.permute.xlu0 %706 }
 0x5ce   : > { %v2458_v22 = vadd.f32 %v707_v24, %v2200_v0  ;;  %1067 = vrot.lane.b32.xlu1 %v844_v20, %s2106_s29 }
 0x5cf   : > { %v714_v25 = vpop.permute.xlu1 %713  ;;  %1822 = vmatpush3.bf16.msra.mxu1 %v2313_v38  ;;  %v305_v38 = vadd.f32 %v2347_v42, %v2247_v19 }
 0x5d0   : > { %v716_v26 = vadd.f32 %v714_v25, %v2205_v1  ;;  %1724 = vmatmul.mubr.msk.f32.vlgmr.msra.gmra.mrb[8].mxu0 %vm105_vm0, %v2458_v22 }
 0x5d1   : > { %1813 = vmatpush3.bf16.msra.mxu0 %v2305_v35  ;;  %1745 = vmatprep.mubr.msk.f32.mxu0 %vm2108_vm1, %v2109_v41  ;;  %v195_v35 = vadd.f32 %v2242_v18, %v2357_v49 }
 0x5d2   : > { %939 = vrot.lane.b32.xlu1 %v716_v26, %s2106_s29  ;;  %1814 = vmatprep.subr.bf16.mxu0 %v2107_v33 }
 0x5d5   : > { %1816 = vmatpush3.bf16.msra.mxu0 %v2319_v40 }
 0x5d6   : > { %1090 = vperm.xlu1 %1879, %v1558_v31  }
 0x5da   : > { %962 = vperm.xlu1 %1879, %v1550_v27  }
 0x640   : > { %v1068_v56 = vpop.permute.xlu1 %1067 }
 0x644   : > { %v940_v59 = vpop.permute.xlu1 %939 }
 0x655   : > { %v1091_v31 = vpop.permute.xlu1 %1090 }
 0x69d   : > { %v1051_v28 = vpop.f32.mrb[8].mxu1 }
 0x69e   : > { %v1055_v29 = vadd.f32 %v1051_v28, %v305_v38  ;;  %v1736_v30 = vpop.f32.mrb[9].mxu1 }
 0x6a0   : > { %1912 = vtanh.f32 %v1055_v29  ;;  %v1559_v36 = vmul.f32 -1.442695, %v1055_v29 }
 0x6a3   : > { %v923_v41 = vpop.f32.mrb[8].mxu0 }
 0x6a4   : > { %v927_v32 = vadd.f32 %v923_v41, %v195_v35  ;;  %v1725_v34 = vpop.f32.mrb[9].mxu0 }
 0x6a6   : > { %1914 = vtanh.f32 %v927_v32  ;;  %v1551_v42 = vmul.f32 -1.442695, %v927_v32  ;;  %v963_v32 = vpop.permute.xlu1 %962 }
 0x6a7   : > { %1916 = vpow2.f32 %v1559_v36 }
 0x6a8   : > { %1918 = vpow2.f32 %v1551_v42 }
 0x6aa   : > { %v1913_v33 = vpop.eup %1912 }
 0x6ab   : > { %1072 = vrot.lane.b32.xlu0 %v1913_v33, %s2106_s29 }
 0x6b0   : > { %v1915_v40 = vpop.eup %1914 }
 0x6b1   : > { %944 = vrot.lane.b32.xlu0 %v1915_v40, %s2106_s29  ;;  %v1917_v37 = vpop.eup %1916 }
 0x6b2   : > { %v1062_v39 = vadd.f32 1.0, %v1917_v37  ;;  %v1919_v45 = vpop.eup %1918 }
 0x6b3   : > { %v934_v46 = vadd.f32 1.0, %v1919_v45 }
 0x6b4   : > { %1920 = vrcp.f32 %v1062_v39 }
 0x6b5   : > { %1922 = vrcp.f32 %v934_v46 }
 0x6be   : > { %v1921_v49 = vpop.eup %1920 }
 0x6bf   : > { %v1923_v52 = vpop.eup %1922  ;;  %v1070_v57 = vmul.f32 %v1921_v49, %v1068_v56 }
 0x6c0   : > { %v942_v60 = vmul.f32 %v1923_v52, %v940_v59 }
 0x71d   : > { %v1073_v50 = vpop.permute.xlu0 %1072 }
 0x71e   : > { %v1075_v51 = vmul.f32 %v1921_v49, %v1073_v50  ;;  %v1316_v50 = vld [vmem:[%s2369_s12] sm:$0xff] }
 0x720   : > { %1077 = vrot.lane.b32.xlu0 %v1075_v51, %s2106_s29  ;;  %v1566_v51 = vld [vmem:[%s2376_s13 + $0x18] sm:$0xff] }
 0x723   : > { %v945_v53 = vpop.permute.xlu0 %944 }
 0x724   : > { %v947_v54 = vmul.f32 %v1923_v52, %v945_v53 }
 0x726   : > { %949 = vrot.lane.b32.xlu0 %v947_v54, %s2106_s29 }
 0x792   : > { %v1078_v48 = vpop.permute.xlu0 %1077 }
 0x793   : > { %v1080_v58 = vadd.f32 %v1078_v48, %v1070_v57  ;;  %v200_v57 = vadd.f32 %v2353_v47, %v2242_v18 }
 0x795   : > { %1924 = vtanh.f32 %v1080_v58  ;;  %v1099_v27 = vsub.f32 %v1080_v58, %v2398_v23 }
 0x797   : > { %v1100_v41 = vmul.f32 %v1099_v27, %v1091_v31 }
 0x798   : > { %v950_v61 = vpop.permute.xlu0 %949 }
 0x799   : > { %v952_v62 = vadd.f32 %v950_v61, %v942_v60 }
 0x79b   : > { %1926 = vtanh.f32 %v952_v62  ;;  %v971_v30 = vsub.f32 %v952_v62, %v2398_v23 }
 0x79d   : > { %v972_v33 = vmul.f32 %v971_v30, %v963_v32 }
 0x79f   : > { %v1925_v63 = vpop.eup %1924 }
 0x7a0   : > { %1083 = vrot.lane.b32.xlu0 %v1925_v63, %s2106_s29 }
 0x7a5   : > { %v1927_v20 = vpop.eup %1926 }
 0x7a6   : > { %955 = vrot.lane.b32.xlu0 %v1927_v20, %s2106_s29 }
 0x812   : > { %v1084_v24 = vpop.permute.xlu0 %1083 }
 0x813   : > { %v1086_v25 = vmul.f32 %v1921_v49, %v1084_v24 }
 0x815   : > { %v1087_v26 = vsub.f32 %v1086_v25, %v2385_v55 }
 0x817   : > { %v1093_v38 = vmul.f32 %v1091_v31, %v1087_v26 }
 0x818   : > { %v956_v28 = vpop.permute.xlu0 %955 }
 0x819   : > { %v958_v29 = vmul.f32 %v1923_v52, %v956_v28  ;;  %1095 = vrot.lane.b32.xlu1 %v1093_v38, %s2111_s14  ;;  %v300_v52 = vadd.f32 %v2247_v19, %v2351_v44 }
 0x81b   : > { %v959_v35 = vsub.f32 %v958_v29, %v2385_v55 }
 0x81d   : > { %1102 = vrot.lane.b32.xlu1 %v1100_v41, %s2112_s16  ;;  %v965_v34 = vmul.f32 %v963_v32, %v959_v35 }
 0x81f   : > { %967 = vrot.lane.b32.xlu0 %v965_v34, %s2111_s14 }
 0x821   : > { %974 = vrot.lane.b32.xlu1 %v972_v33, %s2112_s16 }
 0x88b   : > { %v1096_v40 = vpop.permute.xlu1 %1095 }
 0x88c   : > { %v2492_v36 = vadd.f32 %v1096_v40, %v2200_v0 }
 0x88e   : > { %1757 = vmatmul.mubr.msk.f32.vlgmr.msra.gmra.mrb[10].mxu1 %vm105_vm0, %v2492_v36 }
 0x88f   : > { %v1103_v42 = vpop.permute.xlu1 %1102 }
 0x890   : > { %v1105_v37 = vadd.f32 %v1103_v42, %v2205_v1 }
 0x891   : > { %v968_v39 = vpop.permute.xlu0 %967 }
 0x892   : > { %v2498_v45 = vadd.f32 %v968_v39, %v2200_v0  ;;  %1325 = vrot.lane.b32.xlu1 %v1105_v37, %s2106_s29 }
 0x893   : > { %v975_v46 = vpop.permute.xlu1 %974 }
 0x894   : > { %v977_v49 = vadd.f32 %v975_v46, %v2205_v1  ;;  %1746 = vmatmul.mubr.msk.f32.vlgmr.msra.gmra.mrb[10].mxu0 %vm105_vm0, %v2498_v45 }
 0x896   : > { %1200 = vrot.lane.b32.xlu1 %v977_v49, %s2106_s29 }
 0x89a   : > { %1348 = vperm.xlu1 %1879, %v1316_v50  }
 0x89e   : > { %1223 = vperm.xlu1 %1879, %v1566_v51  }
 0x904   : > { %v1326_v29 = vpop.permute.xlu1 %1325 }
 0x908   : > { %v1201_v32 = vpop.permute.xlu1 %1200 }
 0x919   : > { %v1349_v39 = vpop.permute.xlu1 %1348 }
 0x91d   : > { %v1224_v49 = vpop.permute.xlu1 %1223 }
 0x961   : > { %v1310_v53 = vpop.f32.mrb[10].mxu1 }
 0x962   : > { %v1314_v54 = vadd.f32 %v1310_v53, %v300_v52  ;;  %v1758_v56 = vpop.f32.mrb[11].mxu1 }
 0x964   : > { %1928 = vtanh.f32 %v1314_v54  ;;  %v1572_v62 = vmul.f32 -1.442695, %v1314_v54 }
 0x967   : > { %v1184_v48 = vpop.f32.mrb[10].mxu0 }
 0x968   : > { %v1188_v58 = vadd.f32 %v1184_v48, %v200_v57  ;;  %v1747_v59 = vpop.f32.mrb[11].mxu0 }
 0x96a   : > { %1930 = vtanh.f32 %v1188_v58  ;;  %v1567_v44 = vmul.f32 -1.442695, %v1188_v58 }
 0x96b   : > { %1932 = vpow2.f32 %v1572_v62 }
 0x96c   : > { %1934 = vpow2.f32 %v1567_v44 }
 0x96e   : > { %v1929_v60 = vpop.eup %1928 }
 0x96f   : > { %1330 = vrot.lane.b32.xlu0 %v1929_v60, %s2106_s29 }
 0x974   : > { %v1931_v61 = vpop.eup %1930 }
 0x975   : > { %1205 = vrot.lane.b32.xlu0 %v1931_v61, %s2106_s29  ;;  %v1933_v63 = vpop.eup %1932 }
 0x976   : > { %v1320_v20 = vadd.f32 1.0, %v1933_v63  ;;  %v1935_v24 = vpop.eup %1934 }
 0x977   : > { %v1195_v25 = vadd.f32 1.0, %v1935_v24 }
 0x978   : > { %1936 = vrcp.f32 %v1320_v20 }
 0x979   : > { %1938 = vrcp.f32 %v1195_v25 }
 0x982   : > { %v1937_v47 = vpop.eup %1936 }
 0x983   : > { %v1939_v27 = vpop.eup %1938  ;;  %v1328_v30 = vmul.f32 %v1937_v47, %v1326_v29 }
 0x984   : > { %v1203_v34 = vmul.f32 %v1939_v27, %v1201_v32 }
 0x9e1   : > { %v1331_v26 = vpop.permute.xlu0 %1330 }
 0x9e2   : > { %v1333_v31 = vmul.f32 %v1937_v47, %v1331_v26 }
 0x9e4   : > { %1335 = vrot.lane.b32.xlu0 %v1333_v31, %s2106_s29 }
 0x9e7   : > { %v1206_v38 = vpop.permute.xlu0 %1205 }
 0x9e8   : > { %v1208_v28 = vmul.f32 %v1939_v27, %v1206_v38 }
 0x9ea   : > { %1210 = vrot.lane.b32.xlu0 %v1208_v28, %s2106_s29 }
 0xa56   : > { %v1336_v35 = vpop.permute.xlu0 %1335 }
 0xa57   : > { %v1338_v41 = vadd.f32 %v1336_v35, %v1328_v30 }
 0xa59   : > { %1940 = vtanh.f32 %v1338_v41  ;;  %v1357_v59 = vsub.f32 %v1338_v41, %v2398_v23 }
 0xa5b   : > { %v1358_v61 = vmul.f32 %v1357_v59, %v1349_v39 }
 0xa5c   : > { %v1211_v33 = vpop.permute.xlu0 %1210 }
 0xa5d   : > { %v1213_v40 = vadd.f32 %v1211_v33, %v1203_v34 }
 0xa5f   : > { %1942 = vtanh.f32 %v1213_v40  ;;  %v1232_v46 = vsub.f32 %v1213_v40, %v2398_v23 }
 0xa61   : > { %v1233_v50 = vmul.f32 %v1232_v46, %v1224_v49 }
 0xa63   : > { %v1941_v42 = vpop.eup %1940 }
 0xa64   : > { %1341 = vrot.lane.b32.xlu0 %v1941_v42, %s2106_s29 }
 0xa69   : > { %v1943_v37 = vpop.eup %1942 }
 0xa6a   : > { %1216 = vrot.lane.b32.xlu0 %v1943_v37, %s2106_s29 }
 0xa6e   : > { %584 = vrot.lane.b32.xlu0 %v2394_v21, %s2106_s29 }
 0xa72   : > { %1235 = vrot.lane.b32.xlu0 %v1233_v50, %s2112_s16 }
 0xad6   : > { %v1342_v51 = vpop.permute.xlu0 %1341 }
 0xad7   : > { %v1344_v52 = vmul.f32 %v1937_v47, %v1342_v51 }
 0xad9   : > { %v1345_v53 = vsub.f32 %v1344_v52, %v2385_v55 }
 0xadb   : > { %v1351_v54 = vmul.f32 %v1349_v39, %v1345_v53 }
 0xadc   : > { %v1217_v56 = vpop.permute.xlu0 %1216 }
 0xadd   : > { %v1219_v57 = vmul.f32 %v1939_v27, %v1217_v56  ;;  %1353 = vrot.lane.b32.xlu1 %v1351_v54, %s2111_s14 }
 0xadf   : > { %v1220_v48 = vsub.f32 %v1219_v57, %v2385_v55 }
 0xae0   : > { %v585_v58 = vpop.permute.xlu0 %584 }
 0xae1   : > { %1530 = vst.msk [vmem:[%s1443_s3 + $0x18] sm:$0xff] %vm588_vm2, %v585_v58  ;;  %846 = vrot.lane.b32.xlu1 %v2448_v43, %s2106_s29  ;;  %v1226_v21 = vmul.f32 %v1224_v49, %v1220_v48 }
 0xae2   : > { %1538 = vst.msk [vmem:[%s2409_s15 + $0x8] sm:$0xff] %vm105_vm0, %v2458_v22 }
 0xae3   : > { %1228 = vrot.lane.b32.xlu0 %v1226_v21, %s2111_s14 }
 0xae4   : > { %v1236_v60 = vpop.permute.xlu0 %1235 }
 0xae5   : > { %v1238_v55 = vadd.f32 %v1236_v60, %v2205_v1   ;;  %1107 = vrot.lane.b32.xlu1 %v2492_v36, %s2106_s29 }
 0xae7   :  { %1372 = vst.msk [vmem:[#allocation12] sm:$0xff] (%p84_p2), %vm105_vm0, %v1238_v55 }
 0xae9   : > { %1360 = vrot.lane.b32.xlu1 %v1358_v61, %s2112_s16 }
 0xb4f   : > { %v1354_v62 = vpop.permute.xlu1 %1353 }
 0xb50   : > { %v1356_v43 = vadd.f32 %v1354_v62, %v2200_v0  }
 0xb52   : > { %1365 = vrot.lane.b32.xlu0 %v1356_v43, %s2106_s29  ;;  %v2618_v21 = vmov %v1356_v43 }
 0xb53   : > { %v847_v22 = vpop.permute.xlu1 %846 }
 0xb54   : > { %1546 = vst.msk [vmem:[%s1443_s3 + $0x10] sm:$0xff] %vm588_vm2, %v847_v22  ;;  %v2619_v22 = vmov %v1238_v55 }
 0xb55   : > { %1554 = vst.msk [vmem:[%s2409_s15 + $0x10] sm:$0xff] %vm105_vm0, %v2498_v45  ;;  %v1229_v23 = vpop.permute.xlu0 %1228 }
 0xb56   : > { %v1231_v44 = vadd.f32 %v1229_v23, %v2200_v0   ;;  %1374 = vrot.lane.b32.xlu0 (%p84_p2), %v1356_v43, %s2113_s5 }
 0xb57   : > { %v1108_v63 = vpop.permute.xlu1 %1107 }
 0xb58   : > { %1562 = vst.msk [vmem:[%s1443_s3 + $0x8] sm:$0xff] %vm588_vm2, %v1108_v63  ;;  %v2620_v23 = vmov %v1231_v44 }
 0xb59   : > { %1570 = vst.msk [vmem:[%s2409_s15 + $0x18] sm:$0xff] %vm105_vm0, %v1231_v44  ;;  %1371 = vst.msk [vmem:[#allocation10] sm:$0xff] (%p84_p2), %vm105_vm0, %v1231_v44 }
 0xb5b   : > { %v1361_v36 = vpop.permute.xlu1 %1360 }
 0xb5c   : > { %v1363_v24 = vadd.f32 %v1361_v36, %v2205_v1  }
 0xbbf   :  { %86 = sbr.rel (!%p84_p2) target bundleno = 46 (0x2e), region = 106 }
 0xbc4   : > { %v1366_v20 = vpop.permute.xlu0 %1365 }
 0xbc5   : > { %1369 = vst.msk [vmem:[%s1443_s3] sm:$0xff] %vm588_vm2, %v1366_v20  ;;  %v2617_v20 = vmov %v1363_v24 }
 0xbc6   :  { %1999 = shalt.err (!%p1996_p7)
}
 0xbc7   :  { %s2000_s18 = scalar_lea.hbm %s2610_s7, 1024 }
 0xbc8   :  { %p2001_p8 = scmp.ne.s32.totalorder %s2610_s7, %s2000_s18  ;;  %p2004_p9 = scmp.lt.u32.totalorder %s2000_s18, %s2610_s7 }
 0xbca   :  { %p2006_p10 = pnand %p2004_p9, %p2001_p8 }
 0xbcc   :  { %2009 = shalt.err (!%p2006_p10)
}
 0xbcd   :  { %1395 = dma.vmem_to_hbm [thread:$0]  %s1390_s17, 1024, %s2610_s7, [#allocation6], %s2103_s19, %s2103_s19, %s2104_s20   ;;  %v1375_v0 = vpop.permute.xlu0 %1374 }
 0xbce   :  { %1380 = vrot.lane.b32.xlu0 %v1363_v24, %s2113_s5  ;;  %s2115_s27 = smov [#allocation10]   ;;  %s2116_s29 = smov [#allocation12]   ;;  %1378 = vst.msk [vmem:[#allocation10] sm:$0xff] %vm588_vm2, %v1375_v0 }
 0xbcf   :  { %s1402_s28 = sshll.u32 %s2115_s27, 4  ;;  %s1412_s30 = sshll.u32 %s2116_s29, 4  ;;  %s1403_s28 = int_to_ptr.vmem [resolvable:$true] %s1402_s28  ;;  %s1413_s30 = int_to_ptr.vmem [resolvable:$true] %s1412_s30 }
 0xbd0   :  { %s2010_s11 = scalar_lea.vmem %s1403_s28, 128  ;;  %p2015_p12 = scmp.lt.s32.totalorder %s1403_s28, %s1403_s28 }
 0xbd1   :  { %p2011_p11 = scmp.ne.s32.totalorder %s1403_s28, %s2010_s11  ;;  %p2016_p13 = scmp.lt.s32.totalorder %s2010_s11, %s2010_s11 }
 0xbd3   :  { %p2017_p0 = por %p2016_p13, %p2015_p12 }
 0xbd5   :  { %p2018_p1 = pnand %p2017_p0, %p2011_p11 }
 0xbd7   :  { %2021 = shalt.err (!%p2018_p1)
}
 0xbd8   :  { %s2022_s7 = scalar_lea.hbm %s2611_s8, 128 }
 0xbd9   :  { %p2023_p2 = scmp.ne.s32.totalorder %s2611_s8, %s2022_s7  ;;  %p2026_p3 = scmp.lt.u32.totalorder %s2022_s7, %s2611_s8 }
 0xbdb   :  { %p2028_p4 = pnand %p2026_p3, %p2023_p2 }
 0xbdd   :  { %2031 = shalt.err (!%p2028_p4)
}
 0xbde   :  { %1405 = dma.vmem_to_hbm [thread:$0]  %s1403_s28, 128, %s2611_s8, [#allocation11]  }
 0xbdf   :  { %s2032_s16 = scalar_lea.vmem %s1413_s30, 128  ;;  %p2037_p6 = scmp.lt.s32.totalorder %s1413_s30, %s1413_s30 }
 0xbe0   :  { %p2033_p5 = scmp.ne.s32.totalorder %s1413_s30, %s2032_s16  ;;  %p2038_p7 = scmp.lt.s32.totalorder %s2032_s16, %s2032_s16 }
 0xbe2   :  { %p2039_p8 = por %p2038_p7, %p2037_p6 }
 0xbe4   :  { %p2040_p9 = pnand %p2039_p8, %p2033_p5 }
 0xc40   :  { %v1381_v1 = vpop.permute.xlu0 %1380 }
 0xc41   :  { %1383 = vst.msk [vmem:[#allocation12] sm:$0xff] %vm588_vm2, %v1381_v1 }
 0xc42   :  { %2043 = shalt.err (!%p2040_p9)
}
 0xc43   :  { %s2044_s6 = scalar_lea.hbm %s2612_s9, 128 }
 0xc44   :  { %p2045_p10 = scmp.ne.s32.totalorder %s2612_s9, %s2044_s6  ;;  %p2048_p11 = scmp.lt.u32.totalorder %s2044_s6, %s2612_s9 }
 0xc46   :  { %p2050_p12 = pnand %p2048_p11, %p2045_p10 }
 0xc48   :  { %2053 = shalt.err (!%p2050_p12)
}
 0xc49   :  { %1415 = dma.vmem_to_hbm [thread:$0]  %s1413_s30, 128, %s2612_s9, [#allocation11]  }
 0xc4a   :  { %2078 = dma.done.wait [#allocation6], 1024  }
 0xc4b   :  { %2079 = vsyncadd [#allocation6], 4294966272 }
 0xc4c   :  { %2080 = dma.done.wait [#allocation11], 256  }
 0xc4d   :  { %2081 = vsyncadd [#allocation11], 4294967040 }
 0xc4e   :  { %1425 = vsyncpa [#allocation5], 1 }
 0xc4f   :  { %1426 = vsyncpa [#allocation8], 1 }
 0xc50   :  { %1427 = vsyncpa [#allocation6], 1 }
 0xc51   :  { %1428 = vsyncpa [#allocation11], 1 }

</bundles_post_ra>
